<compile_context>
chip_gen: v7x
topology: tpu7x:2x2x1
jax: 0.10.0
libtpu: 0.0.40
codegen_flags: <defaults>
</compile_context>

<pallas_src>
import jax
import jax.numpy as jnp
import numpy as np
from jax.experimental import pallas as pl
from jax.experimental.pallas import tpu as pltpu

EPS = 1e-5
LANE = 128


def bottleneck_kernel(x_ref, w1_ref, g1_ref, b1_ref, w2_ref, g2_ref, b2_ref,
                      w3_ref, g3_ref, b3_ref, o_ref):
    N, H, W, C = x_ref.shape           # C is the lane-padded channel count
    NHW = N * H * W
    inv_n = 1.0 / NHW

    def bn(h, g, b, relu):
        # BatchNorm2d (training): biased batch statistics, single traversal
        # (sum + sum-of-squares), then one fused multiply-add over h.
        s = jnp.sum(h, axis=0, keepdims=True)
        ss = jnp.sum(h * h, axis=0, keepdims=True)
        mean = s * inv_n
        var = jnp.maximum(ss * inv_n - mean * mean, 0.0)
        scale = g * jax.lax.rsqrt(var + EPS)
        shift = b - mean * scale
        out = h * scale + shift
        return jnp.maximum(out, 0.0) if relu else out

    # ---- conv1 (1x1) + bn1 + relu ----------------------------------------
    h1 = jnp.dot(x_ref[...].reshape(NHW, C), w1_ref[...],
                 preferred_element_type=jnp.float32)
    h1 = bn(h1, g1_ref[...], b1_ref[...], relu=True)        # (NHW, C)

    # ---- conv2 (3x3, stride=1, pad=1) + bn2 + relu -------------------------
    # Spatial coordinates of every flattened row, for edge masking.
    y_idx = jax.lax.broadcasted_iota(jnp.int32, (N, H, W, C), 1).reshape(NHW, C)
    x_idx = jax.lax.broadcasted_iota(jnp.int32, (N, H, W, C), 2).reshape(NHW, C)

    def tap(dy, dx):
        # value at row [n, y, x] of h1[n, y+dy, x+dx]; zero outside the image.
        s = dy * W + dx
        v = h1 if s == 0 else jnp.roll(h1, -s, axis=0)
        m = None
        if dy == 1:
            m = y_idx < (H - 1)
        elif dy == -1:
            m = y_idx >= 1
        if dx == 1:
            mx = x_idx < (W - 1)
            m = mx if m is None else (m & mx)
        elif dx == -1:
            mx = x_idx >= 1
            m = mx if m is None else (m & mx)
        return v if m is None else jnp.where(m, v, 0.0)

    # Centre tap first: initialises the accumulator without a zeros pass.
    acc = jnp.dot(tap(0, 0), w2_ref[1, 1, :, :],
                  preferred_element_type=jnp.float32)
    for ky in range(3):
        for kx in range(3):
            if ky == 1 and kx == 1:
                continue
            acc = acc + jnp.dot(tap(ky - 1, kx - 1), w2_ref[ky, kx, :, :],
                                preferred_element_type=jnp.float32)
    h2 = bn(acc, g2_ref[...], b2_ref[...], relu=True)

    # ---- conv3 (1x1) + bn3 + residual + relu -------------------------------
    h3 = jnp.dot(h2, w3_ref[...], preferred_element_type=jnp.float32)
    h3 = bn(h3, g3_ref[...], b3_ref[...], relu=False)

    res = x_ref[...].reshape(NHW, C)   # re-read residual instead of keeping it live
    o_ref[...] = jnp.maximum(h3 + res, 0.0).reshape(N, H, W, C)


def _round_up(n, m=LANE):
    return ((n + m - 1) // m) * m


def _pad_to(a, shape):
    pads = [(0, t - s) for s, t in zip(a.shape, shape)]
    return jnp.pad(a, pads)


@jax.jit
def bottleneck_pallas(x_nhwc, params):
    (w1, g1, b1, w2, g2, b2, w3, g3, b3) = params
    N, H, W, Cin = x_nhwc.shape
    P = w1.shape[1]
    # For this module inplanes == 4 * planes, so a single lane-padded channel
    # width works for every stage; zeros in the pad lanes stay exactly zero
    # through conv / BN / ReLU / residual.
    C = _round_up(max(Cin, P))

    x_p = _pad_to(x_nhwc, (N, H, W, C))
    w1_p = _pad_to(w1, (C, C))
    w2_p = _pad_to(w2, (3, 3, C, C))
    w3_p = _pad_to(w3, (C, C))
    g1_p, b1_p = _pad_to(g1, (1, C)), _pad_to(b1, (1, C))
    g2_p, b2_p = _pad_to(g2, (1, C)), _pad_to(b2, (1, C))
    g3_p, b3_p = _pad_to(g3, (1, C)), _pad_to(b3, (1, C))

    vmem = pl.BlockSpec(memory_space=pltpu.MemorySpace.VMEM)
    out_p = pl.pallas_call(
        bottleneck_kernel,
        out_shape=jax.ShapeDtypeStruct((N, H, W, C), jnp.float32),
        in_specs=[vmem] * 10,
        out_specs=vmem,
        input_output_aliases={0: 0},   # residual input aliases the output buffer
    )(x_p, w1_p, g1_p, b1_p, w2_p, g2_p, b2_p, w3_p, g3_p, b3_p)
    return out_p[..., :Cin]


def ref_forward(x_nhwc, params):
    # pure-JAX reference (independent of the kernel) for sanity checking
    (w1, g1, b1, w2, g2, b2, w3, g3, b3) = params

    def bn(h, g, b):
        m = h.mean(axis=(0, 1, 2), keepdims=True)
        v = ((h - m) ** 2).mean(axis=(0, 1, 2), keepdims=True)
        return (h - m) * jax.lax.rsqrt(v + EPS) * g.reshape(1, 1, 1, -1) \
            + b.reshape(1, 1, 1, -1)

    h = jnp.einsum('nhwc,cp->nhwp', x_nhwc, w1)
    h = jax.nn.relu(bn(h, g1, b1))
    h = jax.lax.conv_general_dilated(h, w2, window_strides=(1, 1),
                                     padding='SAME',
                                     dimension_numbers=('NHWC', 'HWIO', 'NHWC'))
    h = jax.nn.relu(bn(h, g2, b2))
    h = jnp.einsum('nhwp,pc->nhwc', h, w3)
    h = bn(h, g3, b3)
    return jax.nn.relu(h + x_nhwc)


if __name__ == "__main__":
    # Bottleneck(inplanes=16, planes=4): stride=1, downsample=None
    # (inplanes == planes * expansion so the residual add is well defined)
    N, H, W = 2, 8, 8
    inplanes, planes = 16, 4
    key = jax.random.PRNGKey(0)
    kx, k1, k2, k3, kg1, kb1, kg2, kb2, kg3, kb3 = jax.random.split(key, 10)

    # PyTorch input is NCHW; build it, then transpose to NHWC for the kernel.
    x_nchw = jax.random.normal(kx, (N, inplanes, H, W), jnp.float32)
    x_nhwc = jnp.transpose(x_nchw, (0, 2, 3, 1))

    # Deterministic synthetic parameters (conv weights stored as matmul-ready
    # layouts: 1x1 conv -> (Cin, Cout); 3x3 conv -> (kh, kw, Cin, Cout) i.e. HWIO).
    w1 = 0.1 * jax.random.normal(k1, (inplanes, planes), jnp.float32)
    w2 = 0.1 * jax.random.normal(k2, (3, 3, planes, planes), jnp.float32)
    w3 = 0.1 * jax.random.normal(k3, (planes, planes * 4), jnp.float32)
    # BatchNorm affine params as (1, C) rows for lane-friendly broadcast.
    g1 = 1.0 + 0.1 * jax.random.normal(kg1, (1, planes), jnp.float32)
    b1 = 0.1 * jax.random.normal(kb1, (1, planes), jnp.float32)
    g2 = 1.0 + 0.1 * jax.random.normal(kg2, (1, planes), jnp.float32)
    b2 = 0.1 * jax.random.normal(kb2, (1, planes), jnp.float32)
    g3 = 1.0 + 0.1 * jax.random.normal(kg3, (1, planes * 4), jnp.float32)
    b3 = 0.1 * jax.random.normal(kb3, (1, planes * 4), jnp.float32)

    params = (w1, g1, b1, w2, g2, b2, w3, g3, b3)

    out = bottleneck_pallas(x_nhwc, params)
    out = jax.block_until_ready(out)

    ref = ref_forward(x_nhwc, params)
    np.testing.assert_allclose(np.asarray(out), np.asarray(ref),
                               rtol=1e-4, atol=1e-4)
    print("KERNEL_OK")
</pallas_src>

<mosaic_0001>
module attributes {stable_mosaic.version = 11 : i64} {
  func.func @bottleneck_kernel(%arg0: memref<2x8x8x128xf32, #tpu.memory_space<vmem>>, %arg1: memref<128x128xf32, #tpu.memory_space<vmem>>, %arg2: memref<1x128xf32, #tpu.memory_space<vmem>>, %arg3: memref<1x128xf32, #tpu.memory_space<vmem>>, %arg4: memref<3x3x128x128xf32, #tpu.memory_space<vmem>>, %arg5: memref<1x128xf32, #tpu.memory_space<vmem>>, %arg6: memref<1x128xf32, #tpu.memory_space<vmem>>, %arg7: memref<128x128xf32, #tpu.memory_space<vmem>>, %arg8: memref<1x128xf32, #tpu.memory_space<vmem>>, %arg9: memref<1x128xf32, #tpu.memory_space<vmem>>, %arg10: memref<2x8x8x128xf32, #tpu.memory_space<vmem>>) attributes {dimension_semantics = [], scalar_prefetch = 0 : i64, scratch_operands = 0 : i64, tpu.core_type = #tpu.core_type<tc>} {
    %c0 = arith.constant 0 : index
    %c0_0 = arith.constant 0 : index
    %c0_1 = arith.constant 0 : index
    %c0_2 = arith.constant 0 : index
    %0 = vector.load %arg0[%c0, %c0_0, %c0_1, %c0_2] : memref<2x8x8x128xf32, #tpu.memory_space<vmem>>, vector<2x8x8x128xf32>
    %1 = vector.shape_cast %0 : vector<2x8x8x128xf32> to vector<128x128xf32>
    %c0_3 = arith.constant 0 : index
    %c0_4 = arith.constant 0 : index
    %2 = vector.load %arg1[%c0_3, %c0_4] : memref<128x128xf32, #tpu.memory_space<vmem>>, vector<128x128xf32>
    %cst = arith.constant dense<0.000000e+00> : vector<128x128xf32>
    %3 = tpu.matmul %1, %2, %cst {dimension_numbers = #tpu.dot_dimension_numbers<[1], [0], [0], [1], [0, 0, 1, 1], [], []>} : vector<128x128xf32>, vector<128x128xf32>, vector<128x128xf32> -> vector<128x128xf32>
    %c0_5 = arith.constant 0 : index
    %c0_6 = arith.constant 0 : index
    %4 = vector.load %arg2[%c0_5, %c0_6] : memref<1x128xf32, #tpu.memory_space<vmem>>, vector<1x128xf32>
    %c0_7 = arith.constant 0 : index
    %c0_8 = arith.constant 0 : index
    %5 = vector.load %arg3[%c0_7, %c0_8] : memref<1x128xf32, #tpu.memory_space<vmem>>, vector<1x128xf32>
    %cst_9 = arith.constant dense<0.000000e+00> : vector<128xf32>
    %6 = vector.multi_reduction <add>, %3, %cst_9 [0] : vector<128x128xf32> to vector<128xf32>
    %7 = vector.shape_cast %6 : vector<128xf32> to vector<1x128xf32>
    %8 = arith.mulf %3, %3 : vector<128x128xf32>
    %cst_10 = arith.constant dense<0.000000e+00> : vector<128xf32>
    %9 = vector.multi_reduction <add>, %8, %cst_10 [0] : vector<128x128xf32> to vector<128xf32>
    %10 = vector.shape_cast %9 : vector<128xf32> to vector<1x128xf32>
    %cst_11 = arith.constant 7.812500e-03 : f32
    %11 = vector.broadcast %cst_11 : f32 to vector<1x128xf32>
    %12 = arith.mulf %7, %11 : vector<1x128xf32>
    %cst_12 = arith.constant 7.812500e-03 : f32
    %13 = vector.broadcast %cst_12 : f32 to vector<1x128xf32>
    %14 = arith.mulf %10, %13 : vector<1x128xf32>
    %15 = arith.mulf %12, %12 : vector<1x128xf32>
    %16 = arith.subf %14, %15 : vector<1x128xf32>
    %cst_13 = arith.constant 0.000000e+00 : f32
    %17 = vector.broadcast %cst_13 : f32 to vector<1x128xf32>
    %18 = arith.maximumf %16, %17 : vector<1x128xf32>
    %cst_14 = arith.constant 9.99999974E-6 : f32
    %19 = vector.broadcast %cst_14 : f32 to vector<1x128xf32>
    %20 = arith.addf %18, %19 : vector<1x128xf32>
    %21 = math.rsqrt %20 : vector<1x128xf32>
    %22 = arith.mulf %4, %21 : vector<1x128xf32>
    %23 = arith.mulf %12, %22 : vector<1x128xf32>
    %24 = arith.subf %5, %23 : vector<1x128xf32>
    %25 = vector.broadcast %22 : vector<1x128xf32> to vector<128x128xf32>
    %26 = arith.mulf %3, %25 : vector<128x128xf32>
    %27 = vector.broadcast %24 : vector<1x128xf32> to vector<128x128xf32>
    %28 = arith.addf %26, %27 : vector<128x128xf32>
    %cst_15 = arith.constant 0.000000e+00 : f32
    %29 = vector.broadcast %cst_15 : f32 to vector<128x128xf32>
    %30 = arith.maximumf %28, %29 : vector<128x128xf32>
    %31 = tpu.iota {dimensions = array<i32: 1>} : vector<2x8x8x128xi32>
    %32 = vector.shape_cast %31 : vector<2x8x8x128xi32> to vector<128x128xi32>
    %33 = tpu.iota {dimensions = array<i32: 2>} : vector<2x8x8x128xi32>
    %34 = vector.shape_cast %33 : vector<2x8x8x128xi32> to vector<128x128xi32>
    %c1 = arith.constant 1 : index
    %c1_16 = arith.constant 1 : index
    %c0_17 = arith.constant 0 : index
    %c0_18 = arith.constant 0 : index
    %35 = vector.load %arg4[%c1, %c1_16, %c0_17, %c0_18] : memref<3x3x128x128xf32, #tpu.memory_space<vmem>>, vector<1x1x128x128xf32>
    %36 = vector.shape_cast %35 : vector<1x1x128x128xf32> to vector<128x128xf32>
    %cst_19 = arith.constant dense<0.000000e+00> : vector<128x128xf32>
    %37 = tpu.matmul %30, %36, %cst_19 {dimension_numbers = #tpu.dot_dimension_numbers<[1], [0], [0], [1], [0, 0, 1, 1], [], []>} : vector<128x128xf32>, vector<128x128xf32>, vector<128x128xf32> -> vector<128x128xf32>
    %38 = vector.extract_strided_slice %30 {offsets = [119, 0], sizes = [9, 128], strides = [1, 1]} : vector<128x128xf32> to vector<9x128xf32>
    %39 = vector.extract_strided_slice %30 {offsets = [0, 0], sizes = [119, 128], strides = [1, 1]} : vector<128x128xf32> to vector<119x128xf32>
    %40 = tpu.concatenate %38, %39 in 0 : vector<9x128xf32>, vector<119x128xf32> -> vector<128x128xf32>
    %c1_i32 = arith.constant 1 : i32
    %41 = vector.broadcast %c1_i32 : i32 to vector<128x128xi32>
    %42 = arith.cmpi sge, %32, %41 : vector<128x128xi32>
    %c1_i32_20 = arith.constant 1 : i32
    %43 = vector.broadcast %c1_i32_20 : i32 to vector<128x128xi32>
    %44 = arith.cmpi sge, %34, %43 : vector<128x128xi32>
    %45 = arith.andi %42, %44 : vector<128x128xi1>
    %cst_21 = arith.constant 0.000000e+00 : f32
    %46 = vector.broadcast %cst_21 : f32 to vector<128x128xf32>
    %47 = arith.select %45, %40, %46 : vector<128x128xi1>, vector<128x128xf32>
    %c0_22 = arith.constant 0 : index
    %c0_23 = arith.constant 0 : index
    %c0_24 = arith.constant 0 : index
    %c0_25 = arith.constant 0 : index
    %48 = vector.load %arg4[%c0_22, %c0_23, %c0_24, %c0_25] : memref<3x3x128x128xf32, #tpu.memory_space<vmem>>, vector<1x1x128x128xf32>
    %49 = vector.shape_cast %48 : vector<1x1x128x128xf32> to vector<128x128xf32>
    %cst_26 = arith.constant dense<0.000000e+00> : vector<128x128xf32>
    %50 = tpu.matmul %47, %49, %cst_26 {dimension_numbers = #tpu.dot_dimension_numbers<[1], [0], [0], [1], [0, 0, 1, 1], [], []>} : vector<128x128xf32>, vector<128x128xf32>, vector<128x128xf32> -> vector<128x128xf32>
    %51 = arith.addf %37, %50 : vector<128x128xf32>
    %52 = vector.extract_strided_slice %30 {offsets = [120, 0], sizes = [8, 128], strides = [1, 1]} : vector<128x128xf32> to vector<8x128xf32>
    %53 = vector.extract_strided_slice %30 {offsets = [0, 0], sizes = [120, 128], strides = [1, 1]} : vector<128x128xf32> to vector<120x128xf32>
    %54 = tpu.concatenate %52, %53 in 0 : vector<8x128xf32>, vector<120x128xf32> -> vector<128x128xf32>
    %c1_i32_27 = arith.constant 1 : i32
    %55 = vector.broadcast %c1_i32_27 : i32 to vector<128x128xi32>
    %56 = arith.cmpi sge, %32, %55 : vector<128x128xi32>
    %cst_28 = arith.constant 0.000000e+00 : f32
    %57 = vector.broadcast %cst_28 : f32 to vector<128x128xf32>
    %58 = arith.select %56, %54, %57 : vector<128x128xi1>, vector<128x128xf32>
    %c0_29 = arith.constant 0 : index
    %c1_30 = arith.constant 1 : index
    %c0_31 = arith.constant 0 : index
    %c0_32 = arith.constant 0 : index
    %59 = vector.load %arg4[%c0_29, %c1_30, %c0_31, %c0_32] : memref<3x3x128x128xf32, #tpu.memory_space<vmem>>, vector<1x1x128x128xf32>
    %60 = vector.shape_cast %59 : vector<1x1x128x128xf32> to vector<128x128xf32>
    %cst_33 = arith.constant dense<0.000000e+00> : vector<128x128xf32>
    %61 = tpu.matmul %58, %60, %cst_33 {dimension_numbers = #tpu.dot_dimension_numbers<[1], [0], [0], [1], [0, 0, 1, 1], [], []>} : vector<128x128xf32>, vector<128x128xf32>, vector<128x128xf32> -> vector<128x128xf32>
    %62 = arith.addf %51, %61 : vector<128x128xf32>
    %63 = vector.extract_strided_slice %30 {offsets = [121, 0], sizes = [7, 128], strides = [1, 1]} : vector<128x128xf32> to vector<7x128xf32>
    %64 = vector.extract_strided_slice %30 {offsets = [0, 0], sizes = [121, 128], strides = [1, 1]} : vector<128x128xf32> to vector<121x128xf32>
    %65 = tpu.concatenate %63, %64 in 0 : vector<7x128xf32>, vector<121x128xf32> -> vector<128x128xf32>
    %c1_i32_34 = arith.constant 1 : i32
    %66 = vector.broadcast %c1_i32_34 : i32 to vector<128x128xi32>
    %67 = arith.cmpi sge, %32, %66 : vector<128x128xi32>
    %c7_i32 = arith.constant 7 : i32
    %68 = vector.broadcast %c7_i32 : i32 to vector<128x128xi32>
    %69 = arith.cmpi slt, %34, %68 : vector<128x128xi32>
    %70 = arith.andi %67, %69 : vector<128x128xi1>
    %cst_35 = arith.constant 0.000000e+00 : f32
    %71 = vector.broadcast %cst_35 : f32 to vector<128x128xf32>
    %72 = arith.select %70, %65, %71 : vector<128x128xi1>, vector<128x128xf32>
    %c0_36 = arith.constant 0 : index
    %c2 = arith.constant 2 : index
    %c0_37 = arith.constant 0 : index
    %c0_38 = arith.constant 0 : index
    %73 = vector.load %arg4[%c0_36, %c2, %c0_37, %c0_38] : memref<3x3x128x128xf32, #tpu.memory_space<vmem>>, vector<1x1x128x128xf32>
    %74 = vector.shape_cast %73 : vector<1x1x128x128xf32> to vector<128x128xf32>
    %cst_39 = arith.constant dense<0.000000e+00> : vector<128x128xf32>
    %75 = tpu.matmul %72, %74, %cst_39 {dimension_numbers = #tpu.dot_dimension_numbers<[1], [0], [0], [1], [0, 0, 1, 1], [], []>} : vector<128x128xf32>, vector<128x128xf32>, vector<128x128xf32> -> vector<128x128xf32>
    %76 = arith.addf %62, %75 : vector<128x128xf32>
    %77 = vector.extract_strided_slice %30 {offsets = [127, 0], sizes = [1, 128], strides = [1, 1]} : vector<128x128xf32> to vector<1x128xf32>
    %78 = vector.extract_strided_slice %30 {offsets = [0, 0], sizes = [127, 128], strides = [1, 1]} : vector<128x128xf32> to vector<127x128xf32>
    %79 = tpu.concatenate %77, %78 in 0 : vector<1x128xf32>, vector<127x128xf32> -> vector<128x128xf32>
    %c1_i32_40 = arith.constant 1 : i32
    %80 = vector.broadcast %c1_i32_40 : i32 to vector<128x128xi32>
    %81 = arith.cmpi sge, %34, %80 : vector<128x128xi32>
    %cst_41 = arith.constant 0.000000e+00 : f32
    %82 = vector.broadcast %cst_41 : f32 to vector<128x128xf32>
    %83 = arith.select %81, %79, %82 : vector<128x128xi1>, vector<128x128xf32>
    %c1_42 = arith.constant 1 : index
    %c0_43 = arith.constant 0 : index
    %c0_44 = arith.constant 0 : index
    %c0_45 = arith.constant 0 : index
    %84 = vector.load %arg4[%c1_42, %c0_43, %c0_44, %c0_45] : memref<3x3x128x128xf32, #tpu.memory_space<vmem>>, vector<1x1x128x128xf32>
    %85 = vector.shape_cast %84 : vector<1x1x128x128xf32> to vector<128x128xf32>
    %cst_46 = arith.constant dense<0.000000e+00> : vector<128x128xf32>
    %86 = tpu.matmul %83, %85, %cst_46 {dimension_numbers = #tpu.dot_dimension_numbers<[1], [0], [0], [1], [0, 0, 1, 1], [], []>} : vector<128x128xf32>, vector<128x128xf32>, vector<128x128xf32> -> vector<128x128xf32>
    %87 = arith.addf %76, %86 : vector<128x128xf32>
    %88 = vector.extract_strided_slice %30 {offsets = [1, 0], sizes = [127, 128], strides = [1, 1]} : vector<128x128xf32> to vector<127x128xf32>
    %89 = vector.extract_strided_slice %30 {offsets = [0, 0], sizes = [1, 128], strides = [1, 1]} : vector<128x128xf32> to vector<1x128xf32>
    %90 = tpu.concatenate %88, %89 in 0 : vector<127x128xf32>, vector<1x128xf32> -> vector<128x128xf32>
    %c7_i32_47 = arith.constant 7 : i32
    %91 = vector.broadcast %c7_i32_47 : i32 to vector<128x128xi32>
    %92 = arith.cmpi slt, %34, %91 : vector<128x128xi32>
    %cst_48 = arith.constant 0.000000e+00 : f32
    %93 = vector.broadcast %cst_48 : f32 to vector<128x128xf32>
    %94 = arith.select %92, %90, %93 : vector<128x128xi1>, vector<128x128xf32>
    %c1_49 = arith.constant 1 : index
    %c2_50 = arith.constant 2 : index
    %c0_51 = arith.constant 0 : index
    %c0_52 = arith.constant 0 : index
    %95 = vector.load %arg4[%c1_49, %c2_50, %c0_51, %c0_52] : memref<3x3x128x128xf32, #tpu.memory_space<vmem>>, vector<1x1x128x128xf32>
    %96 = vector.shape_cast %95 : vector<1x1x128x128xf32> to vector<128x128xf32>
    %cst_53 = arith.constant dense<0.000000e+00> : vector<128x128xf32>
    %97 = tpu.matmul %94, %96, %cst_53 {dimension_numbers = #tpu.dot_dimension_numbers<[1], [0], [0], [1], [0, 0, 1, 1], [], []>} : vector<128x128xf32>, vector<128x128xf32>, vector<128x128xf32> -> vector<128x128xf32>
    %98 = arith.addf %87, %97 : vector<128x128xf32>
    %99 = vector.extract_strided_slice %30 {offsets = [7, 0], sizes = [121, 128], strides = [1, 1]} : vector<128x128xf32> to vector<121x128xf32>
    %100 = vector.extract_strided_slice %30 {offsets = [0, 0], sizes = [7, 128], strides = [1, 1]} : vector<128x128xf32> to vector<7x128xf32>
    %101 = tpu.concatenate %99, %100 in 0 : vector<121x128xf32>, vector<7x128xf32> -> vector<128x128xf32>
    %c7_i32_54 = arith.constant 7 : i32
    %102 = vector.broadcast %c7_i32_54 : i32 to vector<128x128xi32>
    %103 = arith.cmpi slt, %32, %102 : vector<128x128xi32>
    %c1_i32_55 = arith.constant 1 : i32
    %104 = vector.broadcast %c1_i32_55 : i32 to vector<128x128xi32>
    %105 = arith.cmpi sge, %34, %104 : vector<128x128xi32>
    %106 = arith.andi %103, %105 : vector<128x128xi1>
    %cst_56 = arith.constant 0.000000e+00 : f32
    %107 = vector.broadcast %cst_56 : f32 to vector<128x128xf32>
    %108 = arith.select %106, %101, %107 : vector<128x128xi1>, vector<128x128xf32>
    %c2_57 = arith.constant 2 : index
    %c0_58 = arith.constant 0 : index
    %c0_59 = arith.constant 0 : index
    %c0_60 = arith.constant 0 : index
    %109 = vector.load %arg4[%c2_57, %c0_58, %c0_59, %c0_60] : memref<3x3x128x128xf32, #tpu.memory_space<vmem>>, vector<1x1x128x128xf32>
    %110 = vector.shape_cast %109 : vector<1x1x128x128xf32> to vector<128x128xf32>
    %cst_61 = arith.constant dense<0.000000e+00> : vector<128x128xf32>
    %111 = tpu.matmul %108, %110, %cst_61 {dimension_numbers = #tpu.dot_dimension_numbers<[1], [0], [0], [1], [0, 0, 1, 1], [], []>} : vector<128x128xf32>, vector<128x128xf32>, vector<128x128xf32> -> vector<128x128xf32>
    %112 = arith.addf %98, %111 : vector<128x128xf32>
    %113 = vector.extract_strided_slice %30 {offsets = [8, 0], sizes = [120, 128], strides = [1, 1]} : vector<128x128xf32> to vector<120x128xf32>
    %114 = vector.extract_strided_slice %30 {offsets = [0, 0], sizes = [8, 128], strides = [1, 1]} : vector<128x128xf32> to vector<8x128xf32>
    %115 = tpu.concatenate %113, %114 in 0 : vector<120x128xf32>, vector<8x128xf32> -> vector<128x128xf32>
    %c7_i32_62 = arith.constant 7 : i32
    %116 = vector.broadcast %c7_i32_62 : i32 to vector<128x128xi32>
    %117 = arith.cmpi slt, %32, %116 : vector<128x128xi32>
    %cst_63 = arith.constant 0.000000e+00 : f32
    %118 = vector.broadcast %cst_63 : f32 to vector<128x128xf32>
    %119 = arith.select %117, %115, %118 : vector<128x128xi1>, vector<128x128xf32>
    %c2_64 = arith.constant 2 : index
    %c1_65 = arith.constant 1 : index
    %c0_66 = arith.constant 0 : index
    %c0_67 = arith.constant 0 : index
    %120 = vector.load %arg4[%c2_64, %c1_65, %c0_66, %c0_67] : memref<3x3x128x128xf32, #tpu.memory_space<vmem>>, vector<1x1x128x128xf32>
    %121 = vector.shape_cast %120 : vector<1x1x128x128xf32> to vector<128x128xf32>
    %cst_68 = arith.constant dense<0.000000e+00> : vector<128x128xf32>
    %122 = tpu.matmul %119, %121, %cst_68 {dimension_numbers = #tpu.dot_dimension_numbers<[1], [0], [0], [1], [0, 0, 1, 1], [], []>} : vector<128x128xf32>, vector<128x128xf32>, vector<128x128xf32> -> vector<128x128xf32>
    %123 = arith.addf %112, %122 : vector<128x128xf32>
    %124 = vector.extract_strided_slice %30 {offsets = [9, 0], sizes = [119, 128], strides = [1, 1]} : vector<128x128xf32> to vector<119x128xf32>
    %125 = vector.extract_strided_slice %30 {offsets = [0, 0], sizes = [9, 128], strides = [1, 1]} : vector<128x128xf32> to vector<9x128xf32>
    %126 = tpu.concatenate %124, %125 in 0 : vector<119x128xf32>, vector<9x128xf32> -> vector<128x128xf32>
    %c7_i32_69 = arith.constant 7 : i32
    %127 = vector.broadcast %c7_i32_69 : i32 to vector<128x128xi32>
    %128 = arith.cmpi slt, %32, %127 : vector<128x128xi32>
    %c7_i32_70 = arith.constant 7 : i32
    %129 = vector.broadcast %c7_i32_70 : i32 to vector<128x128xi32>
    %130 = arith.cmpi slt, %34, %129 : vector<128x128xi32>
    %131 = arith.andi %128, %130 : vector<128x128xi1>
    %cst_71 = arith.constant 0.000000e+00 : f32
    %132 = vector.broadcast %cst_71 : f32 to vector<128x128xf32>
    %133 = arith.select %131, %126, %132 : vector<128x128xi1>, vector<128x128xf32>
    %c2_72 = arith.constant 2 : index
    %c2_73 = arith.constant 2 : index
    %c0_74 = arith.constant 0 : index
    %c0_75 = arith.constant 0 : index
    %134 = vector.load %arg4[%c2_72, %c2_73, %c0_74, %c0_75] : memref<3x3x128x128xf32, #tpu.memory_space<vmem>>, vector<1x1x128x128xf32>
    %135 = vector.shape_cast %134 : vector<1x1x128x128xf32> to vector<128x128xf32>
    %cst_76 = arith.constant dense<0.000000e+00> : vector<128x128xf32>
    %136 = tpu.matmul %133, %135, %cst_76 {dimension_numbers = #tpu.dot_dimension_numbers<[1], [0], [0], [1], [0, 0, 1, 1], [], []>} : vector<128x128xf32>, vector<128x128xf32>, vector<128x128xf32> -> vector<128x128xf32>
    %137 = arith.addf %123, %136 : vector<128x128xf32>
    %c0_77 = arith.constant 0 : index
    %c0_78 = arith.constant 0 : index
    %138 = vector.load %arg5[%c0_77, %c0_78] : memref<1x128xf32, #tpu.memory_space<vmem>>, vector<1x128xf32>
    %c0_79 = arith.constant 0 : index
    %c0_80 = arith.constant 0 : index
    %139 = vector.load %arg6[%c0_79, %c0_80] : memref<1x128xf32, #tpu.memory_space<vmem>>, vector<1x128xf32>
    %cst_81 = arith.constant dense<0.000000e+00> : vector<128xf32>
    %140 = vector.multi_reduction <add>, %137, %cst_81 [0] : vector<128x128xf32> to vector<128xf32>
    %141 = vector.shape_cast %140 : vector<128xf32> to vector<1x128xf32>
    %142 = arith.mulf %137, %137 : vector<128x128xf32>
    %cst_82 = arith.constant dense<0.000000e+00> : vector<128xf32>
    %143 = vector.multi_reduction <add>, %142, %cst_82 [0] : vector<128x128xf32> to vector<128xf32>
    %144 = vector.shape_cast %143 : vector<128xf32> to vector<1x128xf32>
    %cst_83 = arith.constant 7.812500e-03 : f32
    %145 = vector.broadcast %cst_83 : f32 to vector<1x128xf32>
    %146 = arith.mulf %141, %145 : vector<1x128xf32>
    %cst_84 = arith.constant 7.812500e-03 : f32
    %147 = vector.broadcast %cst_84 : f32 to vector<1x128xf32>
    %148 = arith.mulf %144, %147 : vector<1x128xf32>
    %149 = arith.mulf %146, %146 : vector<1x128xf32>
    %150 = arith.subf %148, %149 : vector<1x128xf32>
    %cst_85 = arith.constant 0.000000e+00 : f32
    %151 = vector.broadcast %cst_85 : f32 to vector<1x128xf32>
    %152 = arith.maximumf %150, %151 : vector<1x128xf32>
    %cst_86 = arith.constant 9.99999974E-6 : f32
    %153 = vector.broadcast %cst_86 : f32 to vector<1x128xf32>
    %154 = arith.addf %152, %153 : vector<1x128xf32>
    %155 = math.rsqrt %154 : vector<1x128xf32>
    %156 = arith.mulf %138, %155 : vector<1x128xf32>
    %157 = arith.mulf %146, %156 : vector<1x128xf32>
    %158 = arith.subf %139, %157 : vector<1x128xf32>
    %159 = vector.broadcast %156 : vector<1x128xf32> to vector<128x128xf32>
    %160 = arith.mulf %137, %159 : vector<128x128xf32>
    %161 = vector.broadcast %158 : vector<1x128xf32> to vector<128x128xf32>
    %162 = arith.addf %160, %161 : vector<128x128xf32>
    %cst_87 = arith.constant 0.000000e+00 : f32
    %163 = vector.broadcast %cst_87 : f32 to vector<128x128xf32>
    %164 = arith.maximumf %162, %163 : vector<128x128xf32>
    %c0_88 = arith.constant 0 : index
    %c0_89 = arith.constant 0 : index
    %165 = vector.load %arg7[%c0_88, %c0_89] : memref<128x128xf32, #tpu.memory_space<vmem>>, vector<128x128xf32>
    %cst_90 = arith.constant dense<0.000000e+00> : vector<128x128xf32>
    %166 = tpu.matmul %164, %165, %cst_90 {dimension_numbers = #tpu.dot_dimension_numbers<[1], [0], [0], [1], [0, 0, 1, 1], [], []>} : vector<128x128xf32>, vector<128x128xf32>, vector<128x128xf32> -> vector<128x128xf32>
    %c0_91 = arith.constant 0 : index
    %c0_92 = arith.constant 0 : index
    %167 = vector.load %arg8[%c0_91, %c0_92] : memref<1x128xf32, #tpu.memory_space<vmem>>, vector<1x128xf32>
    %c0_93 = arith.constant 0 : index
    %c0_94 = arith.constant 0 : index
    %168 = vector.load %arg9[%c0_93, %c0_94] : memref<1x128xf32, #tpu.memory_space<vmem>>, vector<1x128xf32>
    %cst_95 = arith.constant dense<0.000000e+00> : vector<128xf32>
    %169 = vector.multi_reduction <add>, %166, %cst_95 [0] : vector<128x128xf32> to vector<128xf32>
    %170 = vector.shape_cast %169 : vector<128xf32> to vector<1x128xf32>
    %171 = arith.mulf %166, %166 : vector<128x128xf32>
    %cst_96 = arith.constant dense<0.000000e+00> : vector<128xf32>
    %172 = vector.multi_reduction <add>, %171, %cst_96 [0] : vector<128x128xf32> to vector<128xf32>
    %173 = vector.shape_cast %172 : vector<128xf32> to vector<1x128xf32>
    %cst_97 = arith.constant 7.812500e-03 : f32
    %174 = vector.broadcast %cst_97 : f32 to vector<1x128xf32>
    %175 = arith.mulf %170, %174 : vector<1x128xf32>
    %cst_98 = arith.constant 7.812500e-03 : f32
    %176 = vector.broadcast %cst_98 : f32 to vector<1x128xf32>
    %177 = arith.mulf %173, %176 : vector<1x128xf32>
    %178 = arith.mulf %175, %175 : vector<1x128xf32>
    %179 = arith.subf %177, %178 : vector<1x128xf32>
    %cst_99 = arith.constant 0.000000e+00 : f32
    %180 = vector.broadcast %cst_99 : f32 to vector<1x128xf32>
    %181 = arith.maximumf %179, %180 : vector<1x128xf32>
    %cst_100 = arith.constant 9.99999974E-6 : f32
    %182 = vector.broadcast %cst_100 : f32 to vector<1x128xf32>
    %183 = arith.addf %181, %182 : vector<1x128xf32>
    %184 = math.rsqrt %183 : vector<1x128xf32>
    %185 = arith.mulf %167, %184 : vector<1x128xf32>
    %186 = arith.mulf %175, %185 : vector<1x128xf32>
    %187 = arith.subf %168, %186 : vector<1x128xf32>
    %188 = vector.broadcast %185 : vector<1x128xf32> to vector<128x128xf32>
    %189 = arith.mulf %166, %188 : vector<128x128xf32>
    %190 = vector.broadcast %187 : vector<1x128xf32> to vector<128x128xf32>
    %191 = arith.addf %189, %190 : vector<128x128xf32>
    %c0_101 = arith.constant 0 : index
    %c0_102 = arith.constant 0 : index
    %c0_103 = arith.constant 0 : index
    %c0_104 = arith.constant 0 : index
    %192 = vector.load %arg0[%c0_101, %c0_102, %c0_103, %c0_104] : memref<2x8x8x128xf32, #tpu.memory_space<vmem>>, vector<2x8x8x128xf32>
    %193 = vector.shape_cast %192 : vector<2x8x8x128xf32> to vector<128x128xf32>
    %194 = arith.addf %191, %193 : vector<128x128xf32>
    %cst_105 = arith.constant 0.000000e+00 : f32
    %195 = vector.broadcast %cst_105 : f32 to vector<128x128xf32>
    %196 = arith.maximumf %194, %195 : vector<128x128xf32>
    %197 = vector.shape_cast %196 : vector<128x128xf32> to vector<2x8x8x128xf32>
    %c0_106 = arith.constant 0 : index
    %c0_107 = arith.constant 0 : index
    %c0_108 = arith.constant 0 : index
    %c0_109 = arith.constant 0 : index
    %198 = vector.load %arg10[%c0_106, %c0_107, %c0_108, %c0_109] : memref<2x8x8x128xf32, #tpu.memory_space<vmem>>, vector<2x8x8x128xf32>
    tpu.vector_store %arg10[%c0_106, %c0_107, %c0_108, %c0_109], %197 {strides = array<i32>} : memref<2x8x8x128xf32, #tpu.memory_space<vmem>>, vector<2x8x8x128xf32>,
    return
  }
}

</mosaic_0001>

<bundles_post_ra>
// kernel: bottleneck_pallas.1
= control target key start
LH: loop header
LB: loop body
LE: loop exit
PB: predicated region body
PF: predicated region fallthrough
CT: control target
= control target key end

     0   :  { %vm379_vm0 = vcmask 1040384   ;;  %vm922_vm1 = vcmask 1046528   ;;  %s5796_s1 = inlined_call_operand.vmem [shape: f32[128,128], index: 1, kind: input, shape index: {}]   ;;  %s5797_s0 = inlined_call_operand.vmem [shape: f32[2,8,8,128], index: 0, kind: input, shape index: {}, may-alias: {0,10}]   ;;  %s5798_s4 = inlined_call_operand.vmem [shape: f32[3,3,128,128], index: 4, kind: input, shape index: {}]   ;;  %s5799_s2 = inlined_call_operand.vmem [shape: f32[1,128], index: 2, kind: input, shape index: {}]   ;;  %s5800_s3 = inlined_call_operand.vmem [shape: f32[1,128], index: 3, kind: input, shape index: {}]   ;;  %s5801_s7 = inlined_call_operand.vmem [shape: f32[128,128], index: 7, kind: input, shape index: {}]   ;;  %s5802_s5 = inlined_call_operand.vmem [shape: f32[1,128], index: 5, kind: input, shape index: {}]   ;;  %s5803_s6 = inlined_call_operand.vmem [shape: f32[1,128], index: 6, kind: input, shape index: {}]   ;;  %s5804_s8 = inlined_call_operand.vmem [shape: f32[1,128], index: 8, kind: input, shape index: {}]   ;;  %s5805_s9 = inlined_call_operand.vmem [shape: f32[1,128], index: 9, kind: input, shape index: {}]   ;;  %s5806_s10 = inlined_call_operand.vmem [shape: f32[2,8,8,128], index: 10, kind: output, shape index: {}, may-alias: {0,10}]  }
   0x1   :  { %v51_v0 = vld [vmem:[%s5796_s1] sm:$0xff]  ;;  %v52_v1 = vld [vmem:[%s5796_s1 + $0x8] sm:$0xff]  ;;  %v53_v2 = vld [vmem:[%s5796_s1 + $0x10] sm:$0xff] }
   0x2   :  { %v3704_v3 = vpack.c.bf16 %v52_v1, %v51_v0  ;;  %v54_v4 = vld [vmem:[%s5796_s1 + $0x18] sm:$0xff]  ;;  %v55_v6 = vld [vmem:[%s5796_s1 + $0x20] sm:$0xff]  ;;  %v56_v7 = vld [vmem:[%s5796_s1 + $0x28] sm:$0xff] }
   0x3   :  { %v3708_v5 = vpack.c.bf16 %v54_v4, %v53_v2  ;;  %v3712_v8 = vpack.c.bf16 %v56_v7, %v55_v6  ;;  %v35_v9 = vld [vmem:[%s5797_s0] sm:$0xff]  ;;  %v57_v10 = vld [vmem:[%s5796_s1 + $0x30] sm:$0xff]  ;;  %v58_v11 = vld [vmem:[%s5796_s1 + $0x38] sm:$0xff] }
   0x4   :  { %3705 = vmatprep.subr.bf16.mxu0 %v3704_v3  ;;  %3120 = vmatprep.mubr.f32.mxu0 %v35_v9  ;;  %v3716_v12 = vpack.c.bf16 %v58_v11, %v57_v10  ;;  %v59_v13 = vld [vmem:[%s5796_s1 + $0x40] sm:$0xff]  ;;  %v60_v14 = vld [vmem:[%s5796_s1 + $0x48] sm:$0xff]  ;;  %v61_v16 = vld [vmem:[%s5796_s1 + $0x50] sm:$0xff] }
   0x5   :  { %3707 = vmatpush3.bf16.msra.mxu0 %v3704_v3  ;;  %v3720_v15 = vpack.c.bf16 %v60_v14, %v59_v13  ;;  %v62_v17 = vld [vmem:[%s5796_s1 + $0x58] sm:$0xff]  ;;  %v63_v19 = vld [vmem:[%s5796_s1 + $0x60] sm:$0xff]  ;;  %v64_v20 = vld [vmem:[%s5796_s1 + $0x68] sm:$0xff] }
   0x6   :  { %3709 = vmatprep.subr.bf16.mxu0 %v3708_v5  ;;  %v3724_v18 = vpack.c.bf16 %v62_v17, %v61_v16  ;;  %v3728_v21 = vpack.c.bf16 %v64_v20, %v63_v19  ;;  %v65_v22 = vld [vmem:[%s5796_s1 + $0x70] sm:$0xff]  ;;  %v66_v23 = vld [vmem:[%s5796_s1 + $0x78] sm:$0xff]  ;;  %v36_v25 = vld [vmem:[%s5797_s0 + $0x8] sm:$0xff] }
   0x7   :  { %v3732_v24 = vpack.c.bf16 %v66_v23, %v65_v22  ;;  %v37_v26 = vld [vmem:[%s5797_s0 + $0x10] sm:$0xff]  ;;  %v38_v27 = vld [vmem:[%s5797_s0 + $0x18] sm:$0xff]  ;;  %v39_v28 = vld [vmem:[%s5797_s0 + $0x20] sm:$0xff] }
   0x8   :  { %v40_v29 = vld [vmem:[%s5797_s0 + $0x28] sm:$0xff]  ;;  %v41_v30 = vld [vmem:[%s5797_s0 + $0x30] sm:$0xff]  ;;  %v42_v31 = vld [vmem:[%s5797_s0 + $0x38] sm:$0xff] }
   0x9   :  { %3711 = vmatpush3.bf16.msra.mxu0 %v3708_v5  ;;  %v43_v32 = vld [vmem:[%s5797_s0 + $0x40] sm:$0xff]  ;;  %v44_v33 = vld [vmem:[%s5797_s0 + $0x48] sm:$0xff]  ;;  %v45_v34 = vld [vmem:[%s5797_s0 + $0x50] sm:$0xff] }
   0xa   :  { %3713 = vmatprep.subr.bf16.mxu0 %v3712_v8  ;;  %v46_v35 = vld [vmem:[%s5797_s0 + $0x58] sm:$0xff]  ;;  %v47_v36 = vld [vmem:[%s5797_s0 + $0x60] sm:$0xff]  ;;  %v48_v37 = vld [vmem:[%s5797_s0 + $0x68] sm:$0xff] }
   0xb   :  { %v49_v38 = vld [vmem:[%s5797_s0 + $0x70] sm:$0xff]  ;;  %v50_v39 = vld [vmem:[%s5797_s0 + $0x78] sm:$0xff]  ;;  %v2566_v40 = vld [vmem:[%s5798_s4 + $0x100] sm:$0xff] }
   0xc   :  { %v2567_v41 = vld [vmem:[%s5798_s4 + $0x108] sm:$0xff]  ;;  %v438_v42 = vld [vmem:[%s5798_s4] sm:$0xff]  ;;  %v2568_v46 = vld [vmem:[%s5798_s4 + $0x110] sm:$0xff] }
   0xd   :  { %3715 = vmatpush3.bf16.msra.mxu0 %v3712_v8  ;;  %v3832_v43 = vpack.c.bf16 %v2567_v41, %v2566_v40  ;;  %v439_v44 = vld [vmem:[%s5798_s4 + $0x8] sm:$0xff]  ;;  %v2569_v47 = vld [vmem:[%s5798_s4 + $0x118] sm:$0xff]  ;;  %v440_v48 = vld [vmem:[%s5798_s4 + $0x10] sm:$0xff] }
   0xe   :  { %3717 = vmatprep.subr.bf16.mxu0 %v3716_v12  ;;  %v3736_v45 = vpack.c.bf16 %v439_v44, %v438_v42  ;;  %v3836_v49 = vpack.c.bf16 %v2569_v47, %v2568_v46  ;;  %v441_v50 = vld [vmem:[%s5798_s4 + $0x18] sm:$0xff]  ;;  %v2570_v52 = vld [vmem:[%s5798_s4 + $0x120] sm:$0xff]  ;;  %v2571_v53 = vld [vmem:[%s5798_s4 + $0x128] sm:$0xff] }
   0xf   :  { %3833 = vmatprep.subr.bf16.mxu1 %v3832_v43  ;;  %v3740_v51 = vpack.c.bf16 %v441_v50, %v440_v48  ;;  %v442_v54 = vld [vmem:[%s5798_s4 + $0x20] sm:$0xff]  ;;  %v3840_v55 = vpack.c.bf16 %v2571_v53, %v2570_v52  ;;  %v443_v56 = vld [vmem:[%s5798_s4 + $0x28] sm:$0xff]  ;;  %v2572_v58 = vld [vmem:[%s5798_s4 + $0x130] sm:$0xff] }
  0x10   :  { %3835 = vmatpush3.bf16.msra.mxu1 %v3832_v43  ;;  %v3744_v57 = vpack.c.bf16 %v443_v56, %v442_v54  ;;  %v2573_v59 = vld [vmem:[%s5798_s4 + $0x138] sm:$0xff]  ;;  %v444_v60 = vld [vmem:[%s5798_s4 + $0x30] sm:$0xff]  ;;  %v2574_v0 = vld [vmem:[%s5798_s4 + $0x140] sm:$0xff] }
  0x11   :  { %3719 = vmatpush3.bf16.msra.mxu0 %v3716_v12  ;;  %3837 = vmatprep.subr.bf16.mxu1 %v3836_v49  ;;  %v3844_v61 = vpack.c.bf16 %v2573_v59, %v2572_v58  ;;  %v445_v62 = vld [vmem:[%s5798_s4 + $0x38] sm:$0xff]  ;;  %v2575_v1 = vld [vmem:[%s5798_s4 + $0x148] sm:$0xff]  ;;  %v446_v2 = vld [vmem:[%s5798_s4 + $0x40] sm:$0xff] }
  0x12   :  { %3721 = vmatprep.subr.bf16.mxu0 %v3720_v15  ;;  %v3748_v63 = vpack.c.bf16 %v445_v62, %v444_v60  ;;  %v3848_v3 = vpack.c.bf16 %v2575_v1, %v2574_v0  ;;  %v447_v4 = vld [vmem:[%s5798_s4 + $0x48] sm:$0xff]  ;;  %v2576_v6 = vld [vmem:[%s5798_s4 + $0x150] sm:$0xff]  ;;  %v2577_v7 = vld [vmem:[%s5798_s4 + $0x158] sm:$0xff] }
  0x13   :  { %v3752_v5 = vpack.c.bf16 %v447_v4, %v446_v2  ;;  %v448_v8 = vld [vmem:[%s5798_s4 + $0x50] sm:$0xff]  ;;  %v3852_v9 = vpack.c.bf16 %v2577_v7, %v2576_v6  ;;  %v449_v10 = vld [vmem:[%s5798_s4 + $0x58] sm:$0xff]  ;;  %v2578_v12 = vld [vmem:[%s5798_s4 + $0x160] sm:$0xff] }
  0x14   :  { %3839 = vmatpush3.bf16.msra.mxu1 %v3836_v49  ;;  %v3756_v11 = vpack.c.bf16 %v449_v10, %v448_v8  ;;  %v2579_v13 = vld [vmem:[%s5798_s4 + $0x168] sm:$0xff]  ;;  %v450_v14 = vld [vmem:[%s5798_s4 + $0x60] sm:$0xff]  ;;  %v2581_v19 = vld [vmem:[%s5798_s4 + $0x178] sm:$0xff] }
  0x15   :  { %3723 = vmatpush3.bf16.msra.mxu0 %v3720_v15  ;;  %3841 = vmatprep.subr.bf16.mxu1 %v3840_v55  ;;  %v3856_v15 = vpack.c.bf16 %v2579_v13, %v2578_v12  ;;  %v451_v16 = vld [vmem:[%s5798_s4 + $0x68] sm:$0xff]  ;;  %v452_v20 = vld [vmem:[%s5798_s4 + $0x70] sm:$0xff]  ;;  %v453_v22 = vld [vmem:[%s5798_s4 + $0x78] sm:$0xff] }
  0x16   :  { %3725 = vmatprep.subr.bf16.mxu0 %v3724_v18  ;;  %v3760_v17 = vpack.c.bf16 %v451_v16, %v450_v14  ;;  %v3764_v23 = vpack.c.bf16 %v453_v22, %v452_v20 }
  0x18   :  { %3843 = vmatpush3.bf16.msra.mxu1 %v3840_v55 }
  0x19   :  { %3727 = vmatpush3.bf16.msra.mxu0 %v3724_v18  ;;  %3845 = vmatprep.subr.bf16.mxu1 %v3844_v61  ;;  %v2580_v18 = vld [vmem:[%s5798_s4 + $0x170] sm:$0xff] }
  0x1a   :  { %3729 = vmatprep.subr.bf16.mxu0 %v3728_v21 }
  0x1c   :  { %3847 = vmatpush3.bf16.msra.mxu1 %v3844_v61 }
  0x1d   :  { %3731 = vmatpush3.bf16.msra.mxu0 %v3728_v21  ;;  %3849 = vmatprep.subr.bf16.mxu1 %v3848_v3  ;;  %v3860_v21 = vpack.c.bf16 %v2581_v19, %v2580_v18 }
  0x1e   :  { %3733 = vmatprep.subr.bf16.mxu0 %v3732_v24 }
  0x20   :  { %3851 = vmatpush3.bf16.msra.mxu1 %v3848_v3 }
  0x21   :  { %3735 = vmatpush3.bf16.msra.mxu0 %v3732_v24  ;;  %3853 = vmatprep.subr.bf16.mxu1 %v3852_v9  ;;  %v2596_v24 = vld [vmem:[%s5798_s4 + $0x180] sm:$0xff] }
  0x22   :  { %3737 = vmatprep.subr.bf16.mxu0 %v3736_v45 }
  0x24   :  { %3121 = vmatmul.mubr.f32.vlgmr.msra.gmra.mrb[0].mxu0 %v36_v25  ;;  %3855 = vmatpush3.bf16.msra.mxu1 %v3852_v9  ;;  %v2597_v25 = vld [vmem:[%s5798_s4 + $0x188] sm:$0xff] }
  0x25   :  { %3123 = vmatprep.mubr.f32.mxu0 %v37_v26  ;;  %3739 = vmatpush3.bf16.msra.mxu0 %v3736_v45  ;;  %v5807_v26 = vmov 0.0  }
  0x26   :  { %3741 = vmatprep.subr.bf16.mxu0 %v3740_v51  ;;  %3857 = vmatprep.subr.bf16.mxu1 %v3856_v15 }
  0x27   :  { %3344 = vmatprep.mubr.f32.mxu1 %v5807_v26 }
  0x28   :  { %3124 = vmatmul.mubr.f32.gmra.mrb[2].mxu0 %v38_v27  ;;  %3859 = vmatpush3.bf16.msra.mxu1 %v3856_v15  ;;  %v4462_v27 = vpack.c.bf16 %v2597_v25, %v2596_v24 }
  0x29   :  { %3126 = vmatprep.mubr.f32.mxu0 %v39_v28  ;;  %3743 = vmatpush3.bf16.msra.mxu0 %v3740_v51  ;;  %v2520_v28 = vld [vmem:[%s5798_s4 + $0x200] sm:$0xff] }
  0x2a   :  { %3745 = vmatprep.subr.bf16.mxu0 %v3744_v57  ;;  %3861 = vmatprep.subr.bf16.mxu1 %v3860_v21 }
  0x2c   :  { %3127 = vmatmul.mubr.f32.gmra.mrb[4].mxu0 %v40_v29  ;;  %3863 = vmatpush3.bf16.msra.mxu1 %v3860_v21  ;;  %v2521_v29 = vld [vmem:[%s5798_s4 + $0x208] sm:$0xff] }
  0x2d   :  { %3129 = vmatprep.mubr.f32.mxu0 %v41_v30  ;;  %3747 = vmatpush3.bf16.msra.mxu0 %v3744_v57  ;;  %v4471_v30 = vpack.c.bf16 %v2521_v29, %v2520_v28 }
  0x2e   :  { %3749 = vmatprep.subr.bf16.mxu0 %v3748_v63  ;;  %3865 = vmatprep.subr.bf16.mxu1 %v4462_v27 }
  0x30   :  { %3130 = vmatmul.mubr.f32.gmra.mrb[6].mxu0 %v42_v31 }
  0x31   :  { %3132 = vmatprep.mubr.f32.mxu0 %v43_v32  ;;  %3751 = vmatpush3.bf16.msra.mxu0 %v3748_v63 }
  0x32   :  { %3753 = vmatprep.subr.bf16.mxu0 %v3752_v5 }
  0x34   :  { %3133 = vmatmul.mubr.f32.gmra.mrb[8].mxu0 %v44_v33 }
  0x35   :  { %3135 = vmatprep.mubr.f32.mxu0 %v45_v34  ;;  %3755 = vmatpush3.bf16.msra.mxu0 %v3752_v5 }
  0x36   :  { %3757 = vmatprep.subr.bf16.mxu0 %v3756_v11 }
  0x38   :  { %3136 = vmatmul.mubr.f32.gmra.mrb[10].mxu0 %v46_v35 }
  0x39   :  { %3138 = vmatprep.mubr.f32.mxu0 %v47_v36  ;;  %3759 = vmatpush3.bf16.msra.mxu0 %v3756_v11 }
  0x3a   :  { %3761 = vmatprep.subr.bf16.mxu0 %v3760_v17 }
  0x3c   :  { %3139 = vmatmul.mubr.f32.gmra.mrb[12].mxu0 %v48_v37 }
  0x3d   :  { %3141 = vmatprep.mubr.f32.mxu0 %v49_v38  ;;  %3763 = vmatpush3.bf16.msra.mxu0 %v3760_v17 }
  0x3e   :  { %3765 = vmatprep.subr.bf16.mxu0 %v3764_v23 }
  0x40   :  { %3142 = vmatmul.mubr.f32.gmra.mrb[14].mxu0 %v50_v39 }
  0x41   :  { %3176 = vmatprep.mubr.f32.mxu0 %v5807_v26  ;;  %3767 = vmatpush3.bf16.msra.mxu0 %v3764_v23 }
  0x42   :  { %3769 = vmatprep.subr.bf16.mxu0 %v4471_v30 }
  0xf7   :  { %v4475_v31 = vpop.f32.mrb[0].mxu0 }
  0xf8   :  { %v236_v32 = vmul.f32 %v4475_v31, %v4475_v31  ;;  %v4479_v33 = vpop.f32.mrb[1].mxu0 }
  0xf9   :  { %v214_v34 = vadd.f32 %v4475_v31, %v4479_v33  ;;  %v235_v35 = vmul.f32 %v4479_v33, %v4479_v33 }
  0xfb   :  { %v251_v36 = vadd.f32 %v236_v32, %v235_v35  ;;  %v4485_v37 = vpop.f32.mrb[2].mxu0 }
  0xfc   :  { %v4487_v38 = vpop.f32.mrb[3].mxu0  ;;  %v238_v41 = vmul.f32 %v4485_v37, %v4485_v37 }
  0xfd   :  { %v215_v39 = vadd.f32 %v214_v34, %v4487_v38  ;;  %v237_v40 = vmul.f32 %v4487_v38, %v4487_v38 }
  0xff   :  { %v252_v42 = vadd.f32 %v251_v36, %v237_v40  ;;  %v4494_v43 = vpop.f32.mrb[4].mxu0  ;;  %v216_v44 = vadd.f32 %v4485_v37, %v215_v39 }
 0x100   :  { %v4497_v45 = vpop.f32.mrb[5].mxu0  ;;  %v240_v49 = vmul.f32 %v4494_v43, %v4494_v43 }
 0x101   :  { %v217_v46 = vadd.f32 %v216_v44, %v4497_v45  ;;  %v239_v47 = vmul.f32 %v4497_v45, %v4497_v45  ;;  %v253_v48 = vadd.f32 %v252_v42, %v238_v41 }
 0x103   :  { %v254_v50 = vadd.f32 %v253_v48, %v239_v47  ;;  %v4504_v51 = vpop.f32.mrb[6].mxu0  ;;  %v218_v52 = vadd.f32 %v4494_v43, %v217_v46 }
 0x104   :  { %v4507_v53 = vpop.f32.mrb[7].mxu0  ;;  %v242_v57 = vmul.f32 %v4504_v51, %v4504_v51 }
 0x105   :  { %v219_v54 = vadd.f32 %v218_v52, %v4507_v53  ;;  %v241_v55 = vmul.f32 %v4507_v53, %v4507_v53  ;;  %v255_v56 = vadd.f32 %v254_v50, %v240_v49 }
 0x107   :  { %v256_v58 = vadd.f32 %v255_v56, %v241_v55  ;;  %v4514_v59 = vpop.f32.mrb[8].mxu0  ;;  %v220_v60 = vadd.f32 %v4504_v51, %v219_v54 }
 0x108   :  { %v4517_v61 = vpop.f32.mrb[9].mxu0  ;;  %v244_v1 = vmul.f32 %v4514_v59, %v4514_v59 }
 0x109   :  { %v221_v62 = vadd.f32 %v220_v60, %v4517_v61  ;;  %v243_v63 = vmul.f32 %v4517_v61, %v4517_v61  ;;  %v257_v0 = vadd.f32 %v256_v58, %v242_v57  ;;  %v283_v58 = vlaneseq }
 0x10b   :  { %v258_v2 = vadd.f32 %v257_v0, %v243_v63  ;;  %v4524_v3 = vpop.f32.mrb[10].mxu0  ;;  %v222_v4 = vadd.f32 %v4514_v59, %v221_v62  ;;  %v4545_v60 = vshrl.u32 %v283_v58, 7  ;;  %v212_v62 = vld [vmem:[%s5799_s2] sm:$0x1] }
 0x10c   :  { %v4527_v5 = vpop.f32.mrb[11].mxu0  ;;  %v246_v9 = vmul.f32 %v4524_v3, %v4524_v3 }
 0x10d   :  { %v223_v6 = vadd.f32 %v222_v4, %v4527_v5  ;;  %v245_v7 = vmul.f32 %v4527_v5, %v4527_v5  ;;  %v259_v8 = vadd.f32 %v258_v2, %v244_v1  ;;  %v4551_v63 = vsub.s32 0, %v4545_v60  ;;  %v213_v2 = vld [vmem:[%s5800_s3] sm:$0x1] }
 0x10e   :  { %vm423_vm2 = vcmp.ge.s32.totalorder %v4545_v60, 1  ;;  %vm967_vm3 = vcmp.lt.s32.totalorder %v4545_v60, 7 }
 0x10f   :  { %v260_v10 = vadd.f32 %v259_v8, %v245_v7  ;;  %v4534_v11 = vpop.f32.mrb[12].mxu0  ;;  %v224_v12 = vadd.f32 %v4524_v3, %v223_v6 }
 0x110   :  { %v4537_v13 = vpop.f32.mrb[13].mxu0  ;;  %v248_v17 = vmul.f32 %v4534_v11, %v4534_v11 }
 0x111   :  { %v225_v14 = vadd.f32 %v224_v12, %v4537_v13  ;;  %v247_v15 = vmul.f32 %v4537_v13, %v4537_v13  ;;  %v261_v16 = vadd.f32 %v260_v10, %v246_v9 }
 0x113   :  { %v262_v18 = vadd.f32 %v261_v16, %v247_v15  ;;  %v3143_v19 = vpop.f32.mrb[14].mxu0  ;;  %v226_v20 = vadd.f32 %v4534_v11, %v225_v14 }
 0x114   :  { %v203_v21 = vpop.f32.mrb[15].mxu0  ;;  %v250_v25 = vmul.f32 %v3143_v19, %v3143_v19 }
 0x115   :  { %v227_v22 = vadd.f32 %v226_v20, %v203_v21  ;;  %v249_v23 = vmul.f32 %v203_v21, %v203_v21  ;;  %v263_v24 = vadd.f32 %v262_v18, %v248_v17 }
 0x117   :  { %v228_v28 = vadd.f32 %v3143_v19, %v227_v22  ;;  %v264_v29 = vadd.f32 %v263_v24, %v249_v23 }
 0x119   :  { %v229_v32 = vrot.slane %v228_v28, 4  ;;  %v265_v34 = vadd.f32 %v264_v29, %v250_v25 }
 0x11b   :  { %v230_v35 = vadd.f32 %v229_v32, %v228_v28  ;;  %v266_v36 = vrot.slane %v265_v34, 4 }
 0x11d   :  { %v231_v39 = vrot.slane %v230_v35, 2  ;;  %v267_v40 = vadd.f32 %v266_v36, %v265_v34 }
 0x11f   :  { %v232_v41 = vadd.f32 %v231_v39, %v230_v35  ;;  %v268_v42 = vrot.slane %v267_v40, 2 }
 0x121   :  { %v233_v44 = vrot.slane %v232_v41, 1  ;;  %v269_v46 = vadd.f32 %v268_v42, %v267_v40 }
 0x123   :  { %v234_v47 = vadd.f32 %v233_v44, %v232_v41  ;;  %v270_v48 = vrot.slane %v269_v46, 1 }
 0x125   :  { %v271_v49 = vadd.f32 %v270_v48, %v269_v46  ;;  %v272_v50 = vmul.f32 0.0078125, %v234_v47  ;;  %v2600_v46 = vld [vmem:[%s5798_s4 + $0x1a0] sm:$0xff]  ;;  %v2601_v47 = vld [vmem:[%s5798_s4 + $0x1a8] sm:$0xff] }
 0x127   :  { %v273_v52 = vmul.f32 0.0078125, %v271_v49  ;;  %v274_v54 = vmul.f32 %v272_v50, %v272_v50 }
 0x129   :  { %v275_v55 = vsub.f32 %v273_v52, %v274_v54  ;;  %v2524_v54 = vld [vmem:[%s5798_s4 + $0x220] sm:$0xff] }
 0x12b   :  { %v276_v56 = vmax.f32 %v275_v55, 0.0  ;;  %v2525_v55 = vld [vmem:[%s5798_s4 + $0x228] sm:$0xff] }
 0x12d   :  { %v277_v57 = vadd.f32 1e-05, %v276_v56 }
 0x12f   :  { %4185 = vrsqrt.f32 %v277_v57 }
 0x139   :  { %v4186_v0 = vpop.eup %4185 }
 0x13a   :  { %v279_v1 = vmul.f32 %v4186_v0, %v212_v62 }
 0x13c   :  { %v280_v4 = vmul.f32 %v279_v1, %v272_v50  ;;  %v4557_v6 = vrot.slane %v279_v1, %v4551_v63 }
 0x13e   :  { %v281_v7 = vsub.f32 %v213_v2, %v280_v4  ;;  %v302_v8 = vmul.f32 %v4557_v6, %v203_v21  ;;  %v288_v9 = vmul.f32 %v4557_v6, %v4479_v33  ;;  %v303_v10 = vmul.f32 %v3143_v19, %v4557_v6 }
 0x13f   :  { %v289_v12 = vmul.f32 %v4475_v31, %v4557_v6  ;;  %v290_v14 = vmul.f32 %v4557_v6, %v4487_v38  ;;  %v291_v15 = vmul.f32 %v4485_v37, %v4557_v6  ;;  %v292_v16 = vmul.f32 %v4557_v6, %v4497_v45  ;;  %v2598_v38 = vld [vmem:[%s5798_s4 + $0x190] sm:$0xff]  ;;  %v2599_v37 = vld [vmem:[%s5798_s4 + $0x198] sm:$0xff] }
 0x140   :  { %v4574_v17 = vrot.slane %v281_v7, %v4551_v63  ;;  %v293_v33 = vmul.f32 %v4494_v43, %v4557_v6  ;;  %v294_v18 = vmul.f32 %v4557_v6, %v4507_v53  ;;  %v295_v31 = vmul.f32 %v4504_v51, %v4557_v6 }
 0x141   :  { %v296_v45 = vmul.f32 %v4557_v6, %v4517_v61  ;;  %v297_v43 = vmul.f32 %v4514_v59, %v4557_v6  ;;  %v4594_v53 = vmul.f32 %v4557_v6, %v4527_v5  ;;  %v4598_v51 = vmul.f32 %v4524_v3, %v4557_v6  ;;  %v2522_v59 = vld [vmem:[%s5798_s4 + $0x210] sm:$0xff]  ;;  %v2523_v5 = vld [vmem:[%s5798_s4 + $0x218] sm:$0xff] }
 0x142   :  { %v4601_v19 = vadd.f32 %v4574_v17, %v302_v8  ;;  %v310_v20 = vadd.f32 %v4574_v17, %v288_v9  ;;  %v325_v21 = vadd.f32 %v4574_v17, %v303_v10  ;;  %v311_v61 = vadd.f32 %v4574_v17, %v289_v12  ;;  %v2602_v12 = vld [vmem:[%s5798_s4 + $0x1b0] sm:$0xff] }
 0x143   :  { %v312_v3 = vadd.f32 %v4574_v17, %v290_v14  ;;  %v313_v22 = vadd.f32 %v4574_v17, %v291_v15  ;;  %v314_v23 = vadd.f32 %v4574_v17, %v292_v16  ;;  %v315_v24 = vadd.f32 %v4574_v17, %v293_v33  ;;  %v2603_v16 = vld [vmem:[%s5798_s4 + $0x1b8] sm:$0xff]  ;;  %v2526_v33 = vld [vmem:[%s5798_s4 + $0x230] sm:$0xff] }
 0x144   :  { %v4616_v25 = vmax.f32 %v310_v20, 0.0  ;;  %v4618_v28 = vmax.f32 %v325_v21, 0.0  ;;  %v4620_v29 = vmax.f32 %v311_v61, 0.0  ;;  %v3868_v32 = vpack.c.bf16 %v2599_v37, %v2598_v38 }
 0x145   :  { %v4622_v34 = vmax.f32 %v312_v3, 0.0  ;;  %v3772_v35 = vpack.c.bf16 %v2523_v5, %v2522_v59  ;;  %v4624_v36 = vmax.f32 %v313_v22, 0.0  ;;  %v4626_v39 = vmax.f32 %v314_v23, 0.0  ;;  %v2605_v59 = vld [vmem:[%s5798_s4 + $0x1c8] sm:$0xff]  ;;  %v2528_v3 = vld [vmem:[%s5798_s4 + $0x240] sm:$0xff] }
 0x146   :  { %v5809_v40 = vrot.slane %v4618_v28, 7  ;;  %v380_v41 = vrot.slane %v4616_v25, 7  ;;  %v923_v42 = vrot.slane %v4616_v25, 1  ;;  %v924_v44 = vrot.slane %v4620_v29, 1 }
 0x147   :  { %v381_v48 = vrot.slane %v4620_v29, 7  ;;  %v926_v49 = vrot.slane %v4622_v34, 1  ;;  %v383_v50 = vrot.slane %v4622_v34, 7  ;;  %v928_v52 = vrot.slane %v4624_v36, 1 }
 0x148   :  { %v4651_v56 = vsel %vm379_vm0, %v5809_v40, %v380_v41  ;;  %v4656_v57 = vsel %vm922_vm1, %v923_v42, %v924_v44  ;;  %v385_v58 = vrot.slane %v4624_v36, 7  ;;  %v4659_v62 = vmax.f32 %v315_v24, 0.0  ;;  %v2629_v40 = vld [vmem:[%s5798_s4 + $0x288] sm:$0xff] }
 0x149   :  { %3177 = vmatmul.mubr.msk.f32.vlgmr.msra.gmra.mrb[16].mxu0 %vm423_vm2, %v4651_v56  ;;  %3345 = vmatmul.mubr.msk.f32.vlgmr.msra.gmra.mrb[0].mxu1 %vm967_vm3, %v4656_v57  ;;  %v4668_v0 = vsel %vm379_vm0, %v380_v41, %v381_v48  ;;  %v4671_v1 = vsel %vm922_vm1, %v924_v44, %v926_v49  ;;  %v4678_v2 = vsel %vm379_vm0, %v381_v48, %v383_v50  ;;  %v930_v4 = vrot.slane %v4626_v39, 1 }
 0x14a   :  { %3867 = vmatpush3.bf16.msra.mxu1 %v4462_v27  ;;  %3179 = vmatprep.mubr.msk.f32.mxu0 %vm423_vm2, %v4668_v0  ;;  %v3872_v7 = vpack.c.bf16 %v2601_v47, %v2600_v46  ;;  %v3776_v8 = vpack.c.bf16 %v2525_v55, %v2524_v54  ;;  %v4686_v9 = vsel %vm922_vm1, %v926_v49, %v928_v52  ;;  %v387_v27 = vrot.slane %v4626_v39, 7 }
 0x14b   :  { %3771 = vmatpush3.bf16.msra.mxu0 %v4471_v30  ;;  %3347 = vmatprep.mubr.msk.f32.mxu1 %vm967_vm3, %v4671_v1  ;;  %v316_v10 = vadd.f32 %v4574_v17, %v294_v18  ;;  %v317_v14 = vadd.f32 %v4574_v17, %v295_v31  ;;  %v4695_v30 = vsel %vm379_vm0, %v383_v50, %v385_v58  ;;  %v932_v15 = vrot.slane %v4659_v62, 1  ;;  %v2527_v18 = vld [vmem:[%s5798_s4 + $0x238] sm:$0xff] }
 0x14c   :  { %3869 = vmatprep.subr.bf16.mxu1 %v3868_v32  ;;  %3773 = vmatprep.subr.bf16.mxu0 %v3772_v35  ;;  %v318_v31 = vadd.f32 %v4574_v17, %v296_v45  ;;  %v319_v38 = vadd.f32 %v4574_v17, %v297_v43  ;;  %v389_v37 = vrot.slane %v4659_v62, 7  ;;  %v2604_v45 = vld [vmem:[%s5798_s4 + $0x1c0] sm:$0xff]  ;;  %v320_v43 = vadd.f32 %v4574_v17, %v4594_v53  ;;  %v2529_v53 = vld [vmem:[%s5798_s4 + $0x248] sm:$0xff] }
 0x14d   :  { %3180 = vmatmul.mubr.msk.f32.gmra.mrb[18].mxu0 %vm423_vm2, %v4678_v2  ;;  %3348 = vmatmul.mubr.msk.f32.gmra.mrb[2].mxu1 %vm967_vm3, %v4686_v9  ;;  %v4716_v20 = vmax.f32 %v316_v10, 0.0  ;;  %v4718_v21 = vmax.f32 %v317_v14, 0.0  ;;  %v4729_v61 = vsel %vm922_vm1, %v928_v52, %v930_v4  ;;  %v321_v22 = vadd.f32 %v4574_v17, %v4598_v51 }
 0x14e   :  { %3871 = vmatpush3.bf16.msra.mxu1 %v3868_v32  ;;  %3182 = vmatprep.mubr.msk.f32.mxu0 %vm423_vm2, %v4695_v30  ;;  %v4734_v5 = vmax.f32 %v318_v31, 0.0  ;;  %v300_v23 = vmul.f32 %v4557_v6, %v4537_v13  ;;  %v3876_v32 = vpack.c.bf16 %v2603_v16, %v2602_v12  ;;  %v3780_v41 = vpack.c.bf16 %v2527_v18, %v2526_v33  ;;  %v2531_v16 = vld [vmem:[%s5798_s4 + $0x258] sm:$0xff] }
 0x14f   :  { %3775 = vmatpush3.bf16.msra.mxu0 %v3772_v35  ;;  %3350 = vmatprep.mubr.msk.f32.mxu1 %vm967_vm3, %v4729_v61  ;;  %v934_v24 = vrot.slane %v4716_v20, 1  ;;  %v4750_v44 = vmax.f32 %v319_v38, 0.0  ;;  %v4753_v46 = vsel %vm379_vm0, %v385_v58, %v387_v27  ;;  %v4756_v51 = vsel %vm922_vm1, %v930_v4, %v932_v15 }
 0x150   :  { %3873 = vmatprep.subr.bf16.mxu1 %v3872_v7  ;;  %3777 = vmatprep.subr.bf16.mxu0 %v3776_v8  ;;  %v391_v13 = vrot.slane %v4716_v20, 7  ;;  %v936_v35 = vrot.slane %v4718_v21, 1  ;;  %v4767_v47 = vsel %vm379_vm0, %v387_v27, %v389_v37  ;;  %v3880_v48 = vpack.c.bf16 %v2605_v59, %v2604_v45  ;;  %v2607_v27 = vld [vmem:[%s5798_s4 + $0x1d8] sm:$0xff] }
 0x151   :  { %3183 = vmatmul.mubr.msk.f32.gmra.mrb[20].mxu0 %vm423_vm2, %v4753_v46  ;;  %3351 = vmatmul.mubr.msk.f32.gmra.mrb[4].mxu1 %vm967_vm3, %v4756_v51  ;;  %v3784_v49 = vpack.c.bf16 %v2529_v53, %v2528_v3  ;;  %v4773_v50 = vsel %vm922_vm1, %v932_v15, %v934_v24  ;;  %v393_v52 = vrot.slane %v4718_v21, 7  ;;  %v394_v54 = vrot.slane %v4734_v5, 7  ;;  %v2530_v15 = vld [vmem:[%s5798_s4 + $0x250] sm:$0xff]  ;;  %v2608_v3 = vld [vmem:[%s5798_s4 + $0x1e0] sm:$0xff] }
 0x152   :  { %3875 = vmatpush3.bf16.msra.mxu1 %v3872_v7  ;;  %3185 = vmatprep.mubr.msk.f32.mxu0 %vm423_vm2, %v4767_v47  ;;  %v4777_v55 = vmax.f32 %v320_v43, 0.0  ;;  %v938_v58 = vrot.slane %v4734_v5, 1  ;;  %v939_v4 = vrot.slane %v4750_v44, 1  ;;  %v2606_v7 = vld [vmem:[%s5798_s4 + $0x1d0] sm:$0xff]  ;;  %v322_v10 = vadd.f32 %v4574_v17, %v300_v23  ;;  %v2532_v23 = vld [vmem:[%s5798_s4 + $0x260] sm:$0xff] }
 0x153   :  { %3779 = vmatpush3.bf16.msra.mxu0 %v3776_v8  ;;  %3353 = vmatprep.mubr.msk.f32.mxu1 %vm967_vm3, %v4773_v50  ;;  %v301_v8 = vmul.f32 %v4534_v11, %v4557_v6  ;;  %v4796_v12 = vsel %vm379_vm0, %v389_v37, %v391_v13  ;;  %v4799_v14 = vsel %vm922_vm1, %v934_v24, %v936_v35  ;;  %v4807_v33 = vmax.f32 %v321_v22, 0.0  ;;  %v2609_v22 = vld [vmem:[%s5798_s4 + $0x1e8] sm:$0xff] }
 0x154   :  { %3877 = vmatprep.subr.bf16.mxu1 %v3876_v32  ;;  %3781 = vmatprep.subr.bf16.mxu0 %v3780_v41  ;;  %v951_v11 = vrot.slane %v4618_v28, 1  ;;  %v396_v6 = vrot.slane %v4750_v44, 7  ;;  %v941_v31 = vrot.slane %v4777_v55, 1  ;;  %v3884_v38 = vpack.c.bf16 %v2607_v27, %v2606_v7  ;;  %v2533_v24 = vld [vmem:[%s5798_s4 + $0x268] sm:$0xff] }
 0x155   :  { %3186 = vmatmul.mubr.msk.f32.gmra.mrb[22].mxu0 %vm423_vm2, %v4796_v12  ;;  %3354 = vmatmul.mubr.msk.f32.gmra.mrb[6].mxu1 %vm967_vm3, %v4799_v14  ;;  %v323_v18 = vadd.f32 %v4574_v17, %v301_v8  ;;  %v4820_v37 = vmax.f32 %v322_v10, 0.0  ;;  %v4826_v45 = vsel %vm379_vm0, %v393_v52, %v394_v54  ;;  %v4829_v43 = vsel %vm922_vm1, %v938_v58, %v939_v4 }
 0x156   :  { %3879 = vmatpush3.bf16.msra.mxu1 %v3876_v32  ;;  %3188 = vmatprep.mubr.f32.mxu0 %v5807_v26  ;;  %v398_v17 = vrot.slane %v4777_v55, 7  ;;  %v3788_v59 = vpack.c.bf16 %v2531_v16, %v2530_v15  ;;  %v943_v53 = vrot.slane %v4807_v33, 1  ;;  %v4855_v7 = vsel %vm922_vm1, %v951_v11, %v923_v42  ;;  %v2611_v16 = vld [vmem:[%s5798_s4 + $0x1f8] sm:$0xff] }
 0x157   :  { %3783 = vmatpush3.bf16.msra.mxu0 %v3780_v41  ;;  %3356 = vmatprep.mubr.f32.mxu1 %v5807_v26  ;;  %v4845_v32 = vmax.f32 %v323_v18, 0.0  ;;  %v4848_v41 = vsel %vm922_vm1, %v936_v35, %v938_v58  ;;  %v4864_v27 = vsel %vm379_vm0, %v394_v54, %v396_v6  ;;  %v400_v35 = vrot.slane %v4807_v33, 7 }
 0x158   :  { %3881 = vmatprep.subr.bf16.mxu1 %v3880_v48  ;;  %3785 = vmatprep.subr.bf16.mxu0 %v3784_v49  ;;  %v4868_v58 = vmax.f32 %v4601_v19, 0.0  ;;  %v4874_v42 = vsel %vm922_vm1, %v939_v4, %v941_v31  ;;  %v945_v10 = vrot.slane %v4820_v37, 1  ;;  %v3888_v54 = vpack.c.bf16 %v2609_v22, %v2608_v3  ;;  %v2535_v3 = vld [vmem:[%s5798_s4 + $0x278] sm:$0xff] }
 0x159   :  { %3189 = vmatmul.mubr.msk.f32.gmra.mrb[24].mxu0 %vm423_vm2, %v4826_v45  ;;  %3357 = vmatmul.mubr.msk.f32.gmra.mrb[8].mxu1 %vm967_vm3, %v4829_v43  ;;  %v3792_v8 = vpack.c.bf16 %v2533_v24, %v2532_v23  ;;  %v4881_v19 = vsel %vm379_vm0, %v396_v6, %v398_v17  ;;  %v402_v4 = vrot.slane %v4820_v37, 7  ;;  %v947_v15 = vrot.slane %v4845_v32, 1 }
 0x15a   :  { %3883 = vmatpush3.bf16.msra.mxu1 %v3880_v48  ;;  %3191 = vmatprep.mubr.msk.f32.mxu0 %vm423_vm2, %v4864_v27  ;;  %v4884_v48 = vsel %vm922_vm1, %v941_v31, %v943_v53  ;;  %v4901_v6 = vsel %vm379_vm0, %v398_v17, %v400_v35  ;;  %v404_v18 = vrot.slane %v4845_v32, 7  ;;  %v2534_v31 = vld [vmem:[%s5798_s4 + $0x270] sm:$0xff]  ;;  %v4914_v22 = vsel %vm922_vm1, %v943_v53, %v945_v10 }
 0x15b   :  { %3787 = vmatpush3.bf16.msra.mxu0 %v3784_v49  ;;  %3359 = vmatprep.mubr.msk.f32.mxu1 %vm967_vm3, %v4874_v42  ;;  %v2610_v49 = vld [vmem:[%s5798_s4 + $0x1f0] sm:$0xff]  ;;  %v949_v17 = vrot.slane %v4868_v58, 1  ;;  %v4921_v24 = vsel %vm379_vm0, %v400_v35, %v402_v4  ;;  %v406_v26 = vrot.slane %v4868_v58, 7  ;;  %v3796_v53 = vpack.c.bf16 %v2535_v3, %v2534_v31 }
 0x15c   :  { %3885 = vmatprep.subr.bf16.mxu1 %v3884_v38  ;;  %3789 = vmatprep.subr.bf16.mxu0 %v3788_v59  ;;  %v3892_v23 = vpack.c.bf16 %v2611_v16, %v2610_v49  ;;  %v4940_v35 = vsel %vm379_vm0, %v402_v4, %v404_v18  ;;  %v2551_v49 = vld [vmem:[%s5798_s4 + $0x88] sm:$0xff] }
 0x15d   :  { %3192 = vmatmul.mubr.msk.f32.gmra.mrb[26].mxu0 %vm423_vm2, %v4881_v19  ;;  %3360 = vmatmul.mubr.msk.f32.gmra.mrb[10].mxu1 %vm967_vm3, %v4884_v48  ;;  %v4952_v16 = vsel %vm922_vm1, %v947_v15, %v949_v17  ;;  %v4960_v31 = vsel %vm379_vm0, %v404_v18, %v406_v26  ;;  %v2553_v18 = vld [vmem:[%s5798_s4 + $0x98] sm:$0xff] }
 0x15e   :  { %3887 = vmatpush3.bf16.msra.mxu1 %v3884_v38  ;;  %3194 = vmatprep.mubr.msk.f32.mxu0 %vm423_vm2, %v4901_v6  ;;  %v4924_v38 = vsel %vm922_vm1, %v945_v10, %v947_v15  ;;  %v2550_v10 = vld [vmem:[%s5798_s4 + $0x80] sm:$0xff] }
 0x15f   :  { %3791 = vmatpush3.bf16.msra.mxu0 %v3788_v59  ;;  %3362 = vmatprep.mubr.msk.f32.mxu1 %vm967_vm3, %v4914_v22  ;;  %v2628_v59 = vld [vmem:[%s5798_s4 + $0x280] sm:$0xff]  ;;  %v3800_v15 = vpack.c.bf16 %v2551_v49, %v2550_v10 }
 0x160   :  { %3889 = vmatprep.subr.bf16.mxu1 %v3888_v54  ;;  %3793 = vmatprep.subr.bf16.mxu0 %v3792_v8  ;;  %v3896_v4 = vpack.c.bf16 %v2629_v40, %v2628_v59  ;;  %v2630_v40 = vld [vmem:[%s5798_s4 + $0x290] sm:$0xff]  ;;  %v2555_v59 = vld [vmem:[%s5798_s4 + $0xa8] sm:$0xff] }
 0x161   :  { %3195 = vmatmul.mubr.msk.f32.gmra.mrb[28].mxu0 %vm423_vm2, %v4921_v24  ;;  %3363 = vmatmul.mubr.msk.f32.gmra.mrb[12].mxu1 %vm967_vm3, %v4924_v38 }
 0x162   :  { %3891 = vmatpush3.bf16.msra.mxu1 %v3888_v54  ;;  %3197 = vmatprep.mubr.msk.f32.mxu0 %vm423_vm2, %v4940_v35  ;;  %v4965_v54 = vsel %vm922_vm1, %v949_v17, %v951_v11  ;;  %v2552_v11 = vld [vmem:[%s5798_s4 + $0x90] sm:$0xff] }
 0x163   :  { %3795 = vmatpush3.bf16.msra.mxu0 %v3792_v8  ;;  %3365 = vmatprep.mubr.msk.f32.mxu1 %vm967_vm3, %v4952_v16  ;;  %v2631_v8 = vld [vmem:[%s5798_s4 + $0x298] sm:$0xff]  ;;  %v3804_v17 = vpack.c.bf16 %v2553_v18, %v2552_v11 }
 0x164   :  { %3893 = vmatprep.subr.bf16.mxu1 %v3892_v23  ;;  %3797 = vmatprep.subr.bf16.mxu0 %v3796_v53  ;;  %v3900_v3 = vpack.c.bf16 %v2631_v8, %v2630_v40  ;;  %v2556_v40 = vld [vmem:[%s5798_s4 + $0xb0] sm:$0xff]  ;;  %v2557_v8 = vld [vmem:[%s5798_s4 + $0xb8] sm:$0xff] }
 0x165   :  { %3198 = vmatmul.mubr.msk.f32.gmra.mrb[30].mxu0 %vm423_vm2, %v4960_v31  ;;  %3366 = vmatmul.mubr.msk.f32.gmra.mrb[14].mxu1 %vm967_vm3, %v4965_v54  ;;  %v3812_v18 = vpack.c.bf16 %v2557_v8, %v2556_v40  ;;  %v2640_v8 = vld [vmem:[%s5798_s4 + $0x2e0] sm:$0xff] }
 0x166   :  { %3895 = vmatpush3.bf16.msra.mxu1 %v3892_v23  ;;  %3232 = vmatprep.mubr.f32.mxu0 %v4616_v25  ;;  %v2632_v23 = vld [vmem:[%s5798_s4 + $0x2a0] sm:$0xff] }
 0x167   :  { %3799 = vmatpush3.bf16.msra.mxu0 %v3796_v53  ;;  %3400 = vmatprep.mubr.msk.f32.mxu1 %vm423_vm2, %v4651_v56  ;;  %v2633_v53 = vld [vmem:[%s5798_s4 + $0x2a8] sm:$0xff]  ;;  %v2554_v56 = vld [vmem:[%s5798_s4 + $0xa0] sm:$0xff] }
 0x168   :  { %3897 = vmatprep.subr.bf16.mxu1 %v3896_v4  ;;  %3801 = vmatprep.subr.bf16.mxu0 %v3800_v15  ;;  %v3904_v10 = vpack.c.bf16 %v2633_v53, %v2632_v23  ;;  %v3808_v49 = vpack.c.bf16 %v2555_v59, %v2554_v56  ;;  %v2558_v23 = vld [vmem:[%s5798_s4 + $0xc0] sm:$0xff]  ;;  %v2559_v53 = vld [vmem:[%s5798_s4 + $0xc8] sm:$0xff]  ;;  %v5054_v56 = vsel %vm379_vm0, %v391_v13, %v393_v52  ;;  %v2560_v13 = vld [vmem:[%s5798_s4 + $0xd0] sm:$0xff] }
 0x169   :  { %3401 = vmatmul.mubr.msk.f32.vlgmr.msra.gmra.mrb[0].mxu1 %vm423_vm2, %v4668_v0  ;;  %v2561_v52 = vld [vmem:[%s5798_s4 + $0xd8] sm:$0xff] }
 0x16a   :  { %3233 = vmatmul.mubr.f32.vlgmr.msra.gmra.mrb[16].mxu0 %v4620_v29  ;;  %3899 = vmatpush3.bf16.msra.mxu1 %v3896_v4  ;;  %v2634_v4 = vld [vmem:[%s5798_s4 + $0x2b0] sm:$0xff]  ;;  %v3820_v40 = vpack.c.bf16 %v2561_v52, %v2560_v13  ;;  %v2660_v13 = vld [vmem:[%s5798_s4 + $0x300] sm:$0xff]  ;;  %v2661_v52 = vld [vmem:[%s5798_s4 + $0x308] sm:$0xff] }
 0x16b   :  { %3235 = vmatprep.mubr.f32.mxu0 %v4622_v34  ;;  %3803 = vmatpush3.bf16.msra.mxu0 %v3800_v15  ;;  %v2635_v15 = vld [vmem:[%s5798_s4 + $0x2b8] sm:$0xff] }
 0x16c   :  { %3403 = vmatprep.mubr.msk.f32.mxu1 %vm423_vm2, %v4678_v2  ;;  %3901 = vmatprep.subr.bf16.mxu1 %v3900_v3  ;;  %v3908_v11 = vpack.c.bf16 %v2635_v15, %v2634_v4  ;;  %v2639_v4 = vld [vmem:[%s5798_s4 + $0x2d8] sm:$0xff] }
 0x16d   :  { %3805 = vmatprep.subr.bf16.mxu0 %v3804_v17  ;;  %3404 = vmatmul.mubr.msk.f32.gmra.mrb[2].mxu1 %vm423_vm2, %v4695_v30 }
 0x16e   :  { %3236 = vmatmul.mubr.f32.gmra.mrb[18].mxu0 %v4624_v36  ;;  %3903 = vmatpush3.bf16.msra.mxu1 %v3900_v3  ;;  %v2636_v3 = vld [vmem:[%s5798_s4 + $0x2c0] sm:$0xff] }
 0x16f   :  { %3238 = vmatprep.mubr.f32.mxu0 %v4626_v39  ;;  %3807 = vmatpush3.bf16.msra.mxu0 %v3804_v17  ;;  %v2637_v17 = vld [vmem:[%s5798_s4 + $0x2c8] sm:$0xff] }
 0x170   :  { %3406 = vmatprep.mubr.msk.f32.mxu1 %vm423_vm2, %v4753_v46  ;;  %3905 = vmatprep.subr.bf16.mxu1 %v3904_v10  ;;  %v3912_v59 = vpack.c.bf16 %v2637_v17, %v2636_v3 }
 0x171   :  { %3809 = vmatprep.subr.bf16.mxu0 %v3808_v49  ;;  %3407 = vmatmul.mubr.msk.f32.gmra.mrb[4].mxu1 %vm423_vm2, %v4767_v47 }
 0x172   :  { %3239 = vmatmul.mubr.f32.gmra.mrb[20].mxu0 %v4659_v62  ;;  %3907 = vmatpush3.bf16.msra.mxu1 %v3904_v10  ;;  %v3816_v10 = vpack.c.bf16 %v2559_v53, %v2558_v23  ;;  %v2642_v23 = vld [vmem:[%s5798_s4 + $0x2f0] sm:$0xff]  ;;  %v2643_v53 = vld [vmem:[%s5798_s4 + $0x2f8] sm:$0xff] }
 0x173   :  { %3241 = vmatprep.mubr.f32.mxu0 %v4716_v20  ;;  %3811 = vmatpush3.bf16.msra.mxu0 %v3808_v49  ;;  %v2638_v49 = vld [vmem:[%s5798_s4 + $0x2d0] sm:$0xff] }
 0x174   :  { %3409 = vmatprep.mubr.msk.f32.mxu1 %vm423_vm2, %v4796_v12  ;;  %3909 = vmatprep.subr.bf16.mxu1 %v3908_v11  ;;  %v3916_v15 = vpack.c.bf16 %v2639_v4, %v2638_v49  ;;  %v3924_v49 = vpack.c.bf16 %v2643_v53, %v2642_v23  ;;  %v2666_v23 = vld [vmem:[%s5798_s4 + $0x330] sm:$0xff] }
 0x175   :  { %3813 = vmatprep.subr.bf16.mxu0 %v3812_v18  ;;  %3410 = vmatmul.mubr.msk.f32.gmra.mrb[6].mxu1 %vm423_vm2, %v5054_v56 }
 0x176   :  { %3242 = vmatmul.mubr.f32.gmra.mrb[22].mxu0 %v4718_v21  ;;  %3911 = vmatpush3.bf16.msra.mxu1 %v3908_v11  ;;  %v2641_v11 = vld [vmem:[%s5798_s4 + $0x2e8] sm:$0xff] }
 0x177   :  { %3244 = vmatprep.mubr.f32.mxu0 %v4734_v5  ;;  %3815 = vmatpush3.bf16.msra.mxu0 %v3812_v18  ;;  %v2563_v18 = vld [vmem:[%s5798_s4 + $0xe8] sm:$0xff]  ;;  %v3920_v3 = vpack.c.bf16 %v2641_v11, %v2640_v8  ;;  %v3928_v8 = vpack.c.bf16 %v2661_v52, %v2660_v13  ;;  %v2662_v11 = vld [vmem:[%s5798_s4 + $0x310] sm:$0xff]  ;;  %v2671_v13 = vld [vmem:[%s5798_s4 + $0x358] sm:$0xff] }
 0x178   :  { %3412 = vmatprep.mubr.msk.f32.mxu1 %vm423_vm2, %v4826_v45  ;;  %3913 = vmatprep.subr.bf16.mxu1 %v3912_v59  ;;  %v2562_v45 = vld [vmem:[%s5798_s4 + $0xe0] sm:$0xff] }
 0x179   :  { %3817 = vmatprep.subr.bf16.mxu0 %v3816_v10  ;;  %3413 = vmatmul.mubr.msk.f32.gmra.mrb[8].mxu1 %vm423_vm2, %v4864_v27  ;;  %v3824_v17 = vpack.c.bf16 %v2563_v18, %v2562_v45  ;;  %v2663_v45 = vld [vmem:[%s5798_s4 + $0x318] sm:$0xff] }
 0x17a   :  { %3245 = vmatmul.mubr.f32.gmra.mrb[24].mxu0 %v4750_v44  ;;  %3915 = vmatpush3.bf16.msra.mxu1 %v3912_v59  ;;  %v2564_v59 = vld [vmem:[%s5798_s4 + $0xf0] sm:$0xff]  ;;  %v3932_v18 = vpack.c.bf16 %v2663_v45, %v2662_v11 }
 0x17b   :  { %3247 = vmatprep.mubr.f32.mxu0 %v4777_v55  ;;  %3819 = vmatpush3.bf16.msra.mxu0 %v3816_v10  ;;  %v2565_v10 = vld [vmem:[%s5798_s4 + $0xf8] sm:$0xff]  ;;  %v2674_v11 = vld [vmem:[%s5798_s4 + $0x370] sm:$0xff] }
 0x17c   :  { %3415 = vmatprep.mubr.msk.f32.mxu1 %vm423_vm2, %v4881_v19  ;;  %3917 = vmatprep.subr.bf16.mxu1 %v3916_v15  ;;  %v3828_v4 = vpack.c.bf16 %v2565_v10, %v2564_v59  ;;  %v2668_v59 = vld [vmem:[%s5798_s4 + $0x340] sm:$0xff]  ;;  %v2669_v10 = vld [vmem:[%s5798_s4 + $0x348] sm:$0xff] }
 0x17d   :  { %3821 = vmatprep.subr.bf16.mxu0 %v3820_v40  ;;  %3416 = vmatmul.mubr.msk.f32.gmra.mrb[10].mxu1 %vm423_vm2, %v4901_v6 }
 0x17e   :  { %3248 = vmatmul.mubr.f32.gmra.mrb[26].mxu0 %v4807_v33  ;;  %3919 = vmatpush3.bf16.msra.mxu1 %v3916_v15  ;;  %v5810_v15 = vrot.slane %v4618_v28, 7 }
 0x17f   :  { %3250 = vmatprep.mubr.f32.mxu0 %v4820_v37  ;;  %3823 = vmatpush3.bf16.msra.mxu0 %v3820_v40 }
 0x180   :  { %3418 = vmatprep.mubr.msk.f32.mxu1 %vm423_vm2, %v4921_v24  ;;  %3921 = vmatprep.subr.bf16.mxu1 %v3920_v3  ;;  %v5135_v40 = vsel %vm379_vm0, %v406_v26, %v5810_v15  ;;  %v5811_v26 = vmov 0.0   ;;  %v2672_v15 = vld [vmem:[%s5798_s4 + $0x360] sm:$0xff] }
 0x181   :  { %3825 = vmatprep.subr.bf16.mxu0 %v3824_v17  ;;  %3419 = vmatmul.mubr.msk.f32.gmra.mrb[12].mxu1 %vm423_vm2, %v4940_v35 }
 0x182   :  { %3251 = vmatmul.mubr.f32.gmra.mrb[28].mxu0 %v4845_v32  ;;  %3923 = vmatpush3.bf16.msra.mxu1 %v3920_v3  ;;  %v2664_v3 = vld [vmem:[%s5798_s4 + $0x320] sm:$0xff] }
 0x183   :  { %3253 = vmatprep.mubr.f32.mxu0 %v4868_v58  ;;  %3827 = vmatpush3.bf16.msra.mxu0 %v3824_v17  ;;  %v2665_v17 = vld [vmem:[%s5798_s4 + $0x328] sm:$0xff] }
 0x184   :  { %3421 = vmatprep.mubr.msk.f32.mxu1 %vm423_vm2, %v4960_v31  ;;  %3925 = vmatprep.subr.bf16.mxu1 %v3924_v49 }
 0x185   :  { %3829 = vmatprep.subr.bf16.mxu0 %v3828_v4  ;;  %3422 = vmatmul.mubr.msk.f32.gmra.mrb[14].mxu1 %vm423_vm2, %v5135_v40 }
 0x186   :  { %3254 = vmatmul.mubr.f32.gmra.mrb[30].mxu0 %v4618_v28  ;;  %3927 = vmatpush3.bf16.msra.mxu1 %v3924_v49  ;;  %v3944_v49 = vpack.c.bf16 %v2669_v10, %v2668_v59  ;;  %v2695_v59 = vld [vmem:[%s5798_s4 + $0x3a8] sm:$0xff]  ;;  %v2696_v10 = vld [vmem:[%s5798_s4 + $0x3b0] sm:$0xff] }
 0x187   :  { %3831 = vmatpush3.bf16.msra.mxu0 %v3828_v4  ;;  %3456 = vmatprep.mubr.msk.f32.mxu1 %vm967_vm3, %v4656_v57  ;;  %v3936_v57 = vpack.c.bf16 %v2665_v17, %v2664_v3  ;;  %v2670_v4 = vld [vmem:[%s5798_s4 + $0x350] sm:$0xff]  ;;  %v2691_v3 = vld [vmem:[%s5798_s4 + $0x388] sm:$0xff] }
 0x188   :  { %3288 = vmatprep.mubr.f32.mxu0 %v5811_v26  ;;  %3929 = vmatprep.subr.bf16.mxu1 %v3928_v8  ;;  %v3948_v52 = vpack.c.bf16 %v2671_v13, %v2670_v4  ;;  %v2699_v4 = vld [vmem:[%s5798_s4 + $0x3c8] sm:$0xff]  ;;  %v2701_v13 = vld [vmem:[%s5798_s4 + $0x3d8] sm:$0xff] }
 0x189   :  { %3457 = vmatmul.mubr.msk.f32.vlgmr.msra.gmra.mrb[0].mxu1 %vm967_vm3, %v4671_v1 }
 0x18a   :  { %3289 = vmatmul.mubr.f32.vlgmr.msra.gmra.mrb[16].mxu0 %v4616_v25  ;;  %3931 = vmatpush3.bf16.msra.mxu1 %v3928_v8  ;;  %v2667_v25 = vld [vmem:[%s5798_s4 + $0x338] sm:$0xff]  ;;  %v2673_v8 = vld [vmem:[%s5798_s4 + $0x368] sm:$0xff] }
 0x18b   :  { %3291 = vmatprep.mubr.f32.mxu0 %v4620_v29  ;;  %3459 = vmatprep.mubr.msk.f32.mxu1 %vm967_vm3, %v4686_v9  ;;  %v3940_v53 = vpack.c.bf16 %v2667_v25, %v2666_v23  ;;  %v2693_v23 = vld [vmem:[%s5798_s4 + $0x398] sm:$0xff] }
 0x18c   :  { %3933 = vmatprep.subr.bf16.mxu1 %v3932_v18 }
 0x18d   :  { %3460 = vmatmul.mubr.msk.f32.gmra.mrb[2].mxu1 %vm967_vm3, %v4729_v61 }
 0x18e   :  { %3292 = vmatmul.mubr.f32.gmra.mrb[18].mxu0 %v4622_v34  ;;  %3935 = vmatpush3.bf16.msra.mxu1 %v3932_v18  ;;  %v2690_v18 = vld [vmem:[%s5798_s4 + $0x380] sm:$0xff] }
 0x18f   :  { %3294 = vmatprep.mubr.f32.mxu0 %v4624_v36  ;;  %3462 = vmatprep.mubr.msk.f32.mxu1 %vm967_vm3, %v4756_v51  ;;  %v3960_v17 = vpack.c.bf16 %v2691_v3, %v2690_v18  ;;  %v2713_v18 = vld [vmem:[%s5798_s4 + $0x438] sm:$0xff]  ;;  %v2715_v3 = vld [vmem:[%s5798_s4 + $0x448] sm:$0xff] }
 0x190   :  { %3937 = vmatprep.subr.bf16.mxu1 %v3936_v57 }
 0x191   :  { %3463 = vmatmul.mubr.msk.f32.gmra.mrb[4].mxu1 %vm967_vm3, %v4773_v50 }
 0x192   :  { %3295 = vmatmul.mubr.f32.gmra.mrb[20].mxu0 %v4626_v39  ;;  %3939 = vmatpush3.bf16.msra.mxu1 %v3936_v57  ;;  %v2692_v57 = vld [vmem:[%s5798_s4 + $0x390] sm:$0xff] }
 0x193   :  { %3297 = vmatprep.mubr.f32.mxu0 %v4659_v62  ;;  %3465 = vmatprep.mubr.msk.f32.mxu1 %vm967_vm3, %v4799_v14  ;;  %v3964_v25 = vpack.c.bf16 %v2693_v23, %v2692_v57  ;;  %v2719_v57 = vld [vmem:[%s5798_s4 + $0x468] sm:$0xff] }
 0x194   :  { %3941 = vmatprep.subr.bf16.mxu1 %v3940_v53 }
 0x195   :  { %3466 = vmatmul.mubr.msk.f32.gmra.mrb[6].mxu1 %vm967_vm3, %v4848_v41 }
 0x196   :  { %3298 = vmatmul.mubr.f32.gmra.mrb[22].mxu0 %v4716_v20  ;;  %3943 = vmatpush3.bf16.msra.mxu1 %v3940_v53  ;;  %v2694_v53 = vld [vmem:[%s5798_s4 + $0x3a0] sm:$0xff] }
 0x197   :  { %3468 = vmatprep.mubr.msk.f32.mxu1 %vm967_vm3, %v4829_v43  ;;  %3300 = vmatprep.mubr.f32.mxu0 %v5811_v26  ;;  %v3952_v43 = vpack.c.bf16 %v2673_v8, %v2672_v15  ;;  %v2704_v15 = vld [vmem:[%s5798_s4 + $0x3f0] sm:$0xff]  ;;  %v2705_v8 = vld [vmem:[%s5798_s4 + $0x3f8] sm:$0xff] }
 0x198   :  { %3945 = vmatprep.subr.bf16.mxu1 %v3944_v49 }
 0x199   :  { %3469 = vmatmul.mubr.msk.f32.gmra.mrb[8].mxu1 %vm967_vm3, %v4874_v42 }
 0x19a   :  { %3301 = vmatmul.mubr.f32.gmra.mrb[24].mxu0 %v4734_v5  ;;  %3947 = vmatpush3.bf16.msra.mxu1 %v3944_v49  ;;  %v2675_v5 = vld [vmem:[%s5798_s4 + $0x378] sm:$0xff] }
 0x19b   :  { %3303 = vmatprep.mubr.f32.mxu0 %v4750_v44  ;;  %3471 = vmatprep.mubr.msk.f32.mxu1 %vm967_vm3, %v4884_v48  ;;  %v3956_v45 = vpack.c.bf16 %v2675_v5, %v2674_v11  ;;  %v2697_v49 = vld [vmem:[%s5798_s4 + $0x3b8] sm:$0xff]  ;;  %v2711_v5 = vld [vmem:[%s5798_s4 + $0x428] sm:$0xff] }
 0x19c   :  { %3949 = vmatprep.subr.bf16.mxu1 %v3948_v52  ;;  %v2709_v11 = vld [vmem:[%s5798_s4 + $0x418] sm:$0xff] }
 0x19d   :  { %3472 = vmatmul.mubr.msk.f32.gmra.mrb[10].mxu1 %vm967_vm3, %v4914_v22 }
 0x19e   :  { %3304 = vmatmul.mubr.f32.gmra.mrb[26].mxu0 %v4777_v55  ;;  %3951 = vmatpush3.bf16.msra.mxu1 %v3948_v52  ;;  %v2703_v52 = vld [vmem:[%s5798_s4 + $0x3e8] sm:$0xff] }
 0x19f   :  { %3306 = vmatprep.mubr.f32.mxu0 %v4807_v33  ;;  %3474 = vmatprep.mubr.msk.f32.mxu1 %vm967_vm3, %v4924_v38 }
 0x1a0   :  { %3953 = vmatprep.subr.bf16.mxu1 %v3952_v43 }
 0x1a1   :  { %3475 = vmatmul.mubr.msk.f32.gmra.mrb[12].mxu1 %vm967_vm3, %v4952_v16 }
 0x1a2   :  { %3307 = vmatmul.mubr.f32.gmra.mrb[28].mxu0 %v4820_v37  ;;  %3955 = vmatpush3.bf16.msra.mxu1 %v3952_v43  ;;  %v2707_v43 = vld [vmem:[%s5798_s4 + $0x408] sm:$0xff] }
 0x1a3   :  { %3309 = vmatprep.mubr.f32.mxu0 %v4845_v32  ;;  %3477 = vmatprep.mubr.msk.f32.mxu1 %vm967_vm3, %v4965_v54 }
 0x1a4   :  { %3957 = vmatprep.subr.bf16.mxu1 %v3956_v45 }
 0x1a5   :  { %3478 = vmatmul.mubr.msk.f32.gmra.mrb[14].mxu1 %vm967_vm3, %v4855_v7 }
 0x1a6   :  { %3310 = vmatmul.mubr.f32.gmra.mrb[30].mxu0 %v4868_v58  ;;  %3959 = vmatpush3.bf16.msra.mxu1 %v3956_v45 }
 0x1a7   :  { %3512 = vmatprep.mubr.msk.f32.mxu1 %vm423_vm2, %v4668_v0  ;;  %3961 = vmatprep.subr.bf16.mxu1 %v3960_v17  ;;  %v3968_v0 = vpack.c.bf16 %v2695_v59, %v2694_v53  ;;  %v2197_v59 = vld [vmem:[%s5801_s7 + $0x20] sm:$0xff] }
 0x1a9   :  { %3513 = vmatmul.mubr.msk.f32.vlgmr.msra.gmra.mrb[0].mxu1 %vm423_vm2, %v4678_v2  ;;  %v3972_v2 = vpack.c.bf16 %v2697_v49, %v2696_v10  ;;  %v2199_v10 = vld [vmem:[%s5801_s7 + $0x30] sm:$0xff] }
 0x1aa   :  { %3963 = vmatpush3.bf16.msra.mxu1 %v3960_v17  ;;  %3515 = vmatprep.mubr.msk.f32.mxu1 %vm423_vm2, %v4695_v30  ;;  %v2698_v30 = vld [vmem:[%s5798_s4 + $0x3c0] sm:$0xff]  ;;  %v2717_v17 = vld [vmem:[%s5798_s4 + $0x458] sm:$0xff] }
 0x1ab   :  { %3965 = vmatprep.subr.bf16.mxu1 %v3964_v25 }
 0x1ad   :  { %3516 = vmatmul.mubr.msk.f32.gmra.mrb[2].mxu1 %vm423_vm2, %v4753_v46  ;;  %v3976_v46 = vpack.c.bf16 %v2699_v4, %v2698_v30  ;;  %v2201_v4 = vld [vmem:[%s5801_s7 + $0x40] sm:$0xff] }
 0x1ae   :  { %3967 = vmatpush3.bf16.msra.mxu1 %v3964_v25  ;;  %3518 = vmatprep.mubr.msk.f32.mxu1 %vm423_vm2, %v4767_v47  ;;  %v2700_v47 = vld [vmem:[%s5798_s4 + $0x3d0] sm:$0xff]  ;;  %v2721_v25 = vld [vmem:[%s5798_s4 + $0x478] sm:$0xff] }
 0x1af   :  { %3969 = vmatprep.subr.bf16.mxu1 %v3968_v0 }
 0x1b1   :  { %3519 = vmatmul.mubr.msk.f32.gmra.mrb[4].mxu1 %vm423_vm2, %v4796_v12  ;;  %v3980_v12 = vpack.c.bf16 %v2701_v13, %v2700_v47  ;;  %v2203_v13 = vld [vmem:[%s5801_s7 + $0x50] sm:$0xff] }
 0x1b2   :  { %3971 = vmatpush3.bf16.msra.mxu1 %v3968_v0  ;;  %3521 = vmatprep.mubr.msk.f32.mxu1 %vm423_vm2, %v5054_v56  ;;  %v2702_v56 = vld [vmem:[%s5798_s4 + $0x3e0] sm:$0xff]  ;;  %v2198_v0 = vld [vmem:[%s5801_s7 + $0x28] sm:$0xff] }
 0x1b3   :  { %3973 = vmatprep.subr.bf16.mxu1 %v3972_v2  ;;  %v4032_v49 = vpack.c.bf16 %v2198_v0, %v2197_v59 }
 0x1b5   :  { %3522 = vmatmul.mubr.f32.gmra.mrb[6].mxu1 %v5811_v26 }
 0x1b6   :  { %3975 = vmatpush3.bf16.msra.mxu1 %v3972_v2  ;;  %3524 = vmatprep.mubr.msk.f32.mxu1 %vm423_vm2, %v4864_v27  ;;  %v3984_v27 = vpack.c.bf16 %v2703_v52, %v2702_v56  ;;  %v2200_v2 = vld [vmem:[%s5801_s7 + $0x38] sm:$0xff]  ;;  %v2205_v52 = vld [vmem:[%s5801_s7 + $0x60] sm:$0xff] }
 0x1b7   :  { %3977 = vmatprep.subr.bf16.mxu1 %v3976_v46  ;;  %v4036_v30 = vpack.c.bf16 %v2200_v2, %v2199_v10 }
 0x1b9   :  { %3525 = vmatmul.mubr.msk.f32.gmra.mrb[8].mxu1 %vm423_vm2, %v4881_v19  ;;  %v3988_v19 = vpack.c.bf16 %v2705_v8, %v2704_v15  ;;  %v2207_v8 = vld [vmem:[%s5801_s7 + $0x70] sm:$0xff] }
 0x1ba   :  { %3979 = vmatpush3.bf16.msra.mxu1 %v3976_v46  ;;  %3527 = vmatprep.mubr.msk.f32.mxu1 %vm423_vm2, %v4901_v6  ;;  %v2706_v6 = vld [vmem:[%s5798_s4 + $0x400] sm:$0xff]  ;;  %v2202_v46 = vld [vmem:[%s5801_s7 + $0x48] sm:$0xff] }
 0x1bb   :  { %3981 = vmatprep.subr.bf16.mxu1 %v3980_v12  ;;  %v4040_v47 = vpack.c.bf16 %v2202_v46, %v2201_v4 }
 0x1bd   :  { %3528 = vmatmul.mubr.msk.f32.gmra.mrb[10].mxu1 %vm423_vm2, %v4921_v24  ;;  %v3992_v24 = vpack.c.bf16 %v2707_v43, %v2706_v6 }
 0x1be   :  { %3983 = vmatpush3.bf16.msra.mxu1 %v3980_v12  ;;  %3530 = vmatprep.mubr.msk.f32.mxu1 %vm423_vm2, %v4940_v35  ;;  %v2708_v35 = vld [vmem:[%s5798_s4 + $0x410] sm:$0xff]  ;;  %v2204_v12 = vld [vmem:[%s5801_s7 + $0x58] sm:$0xff] }
 0x1bf   :  { %3985 = vmatprep.subr.bf16.mxu1 %v3984_v27  ;;  %v4044_v56 = vpack.c.bf16 %v2204_v12, %v2203_v13 }
 0x1c1   :  { %3531 = vmatmul.mubr.msk.f32.gmra.mrb[12].mxu1 %vm423_vm2, %v4960_v31  ;;  %v3996_v31 = vpack.c.bf16 %v2709_v11, %v2708_v35 }
 0x1c2   :  { %3987 = vmatpush3.bf16.msra.mxu1 %v3984_v27  ;;  %3533 = vmatprep.mubr.msk.f32.mxu1 %vm423_vm2, %v5135_v40  ;;  %v2710_v40 = vld [vmem:[%s5798_s4 + $0x420] sm:$0xff]  ;;  %v2206_v27 = vld [vmem:[%s5801_s7 + $0x68] sm:$0xff] }
 0x1c3   :  { %3989 = vmatprep.subr.bf16.mxu1 %v3988_v19  ;;  %v4000_v45 = vpack.c.bf16 %v2711_v5, %v2710_v40  ;;  %v4048_v15 = vpack.c.bf16 %v2206_v27, %v2205_v52 }
 0x1c5   :  { %3534 = vmatmul.mubr.f32.gmra.mrb[14].mxu1 %v5811_v26 }
 0x1c6   :  { %3991 = vmatpush3.bf16.msra.mxu1 %v3988_v19  ;;  %3568 = vmatprep.mubr.f32.mxu1 %v4620_v29  ;;  %v2712_v29 = vld [vmem:[%s5798_s4 + $0x430] sm:$0xff]  ;;  %v2208_v19 = vld [vmem:[%s5801_s7 + $0x78] sm:$0xff] }
 0x1c7   :  { %3993 = vmatprep.subr.bf16.mxu1 %v3992_v24  ;;  %v4052_v6 = vpack.c.bf16 %v2208_v19, %v2207_v8 }
 0x1c9   :  { %3569 = vmatmul.mubr.f32.vlgmr.msra.gmra.mrb[0].mxu1 %v4622_v34  ;;  %v4004_v34 = vpack.c.bf16 %v2713_v18, %v2712_v29 }
 0x1ca   :  { %3995 = vmatpush3.bf16.msra.mxu1 %v3992_v24  ;;  %3571 = vmatprep.mubr.f32.mxu1 %v4624_v36  ;;  %v2714_v36 = vld [vmem:[%s5798_s4 + $0x440] sm:$0xff] }
 0x1cb   :  { %3997 = vmatprep.subr.bf16.mxu1 %v3996_v31 }
 0x1cd   :  { %3572 = vmatmul.mubr.f32.gmra.mrb[2].mxu1 %v4626_v39  ;;  %v4008_v39 = vpack.c.bf16 %v2715_v3, %v2714_v36 }
 0x1ce   :  { %3999 = vmatpush3.bf16.msra.mxu1 %v3996_v31  ;;  %3574 = vmatprep.mubr.f32.mxu1 %v4659_v62  ;;  %v2716_v62 = vld [vmem:[%s5798_s4 + $0x450] sm:$0xff] }
 0x1cf   :  { %4001 = vmatprep.subr.bf16.mxu1 %v4000_v45 }
 0x1d1   :  { %3575 = vmatmul.mubr.f32.gmra.mrb[4].mxu1 %v4716_v20  ;;  %v4012_v20 = vpack.c.bf16 %v2717_v17, %v2716_v62 }
 0x1d2   :  { %4003 = vmatpush3.bf16.msra.mxu1 %v4000_v45  ;;  %3577 = vmatprep.mubr.f32.mxu1 %v4718_v21  ;;  %v2718_v21 = vld [vmem:[%s5798_s4 + $0x460] sm:$0xff] }
 0x1d3   :  { %4005 = vmatprep.subr.bf16.mxu1 %v4004_v34  ;;  %v4016_v23 = vpack.c.bf16 %v2719_v57, %v2718_v21 }
 0x1d5   :  { %3578 = vmatmul.mubr.f32.gmra.mrb[6].mxu1 %v5811_v26 }
 0x1d6   :  { %4007 = vmatpush3.bf16.msra.mxu1 %v4004_v34  ;;  %3580 = vmatprep.mubr.f32.mxu1 %v4750_v44  ;;  %v2720_v44 = vld [vmem:[%s5798_s4 + $0x470] sm:$0xff] }
 0x1d7   :  { %4009 = vmatprep.subr.bf16.mxu1 %v4008_v39 }
 0x1d9   :  { %3581 = vmatmul.mubr.f32.gmra.mrb[8].mxu1 %v4777_v55  ;;  %v4020_v55 = vpack.c.bf16 %v2721_v25, %v2720_v44 }
 0x1da   :  { %4011 = vmatpush3.bf16.msra.mxu1 %v4008_v39  ;;  %3583 = vmatprep.mubr.f32.mxu1 %v4807_v33 }
 0x1db   :  { %4013 = vmatprep.subr.bf16.mxu1 %v4012_v20 }
 0x1dd   :  { %3584 = vmatmul.mubr.f32.gmra.mrb[10].mxu1 %v4820_v37 }
 0x1de   :  { %4015 = vmatpush3.bf16.msra.mxu1 %v4012_v20  ;;  %3586 = vmatprep.mubr.f32.mxu1 %v4845_v32 }
 0x1df   :  { %4017 = vmatprep.subr.bf16.mxu1 %v4016_v23 }
 0x1e1   :  { %3587 = vmatmul.mubr.f32.gmra.mrb[12].mxu1 %v4868_v58 }
 0x1e2   :  { %4019 = vmatpush3.bf16.msra.mxu1 %v4016_v23  ;;  %3589 = vmatprep.mubr.f32.mxu1 %v4618_v28 }
 0x1e3   :  { %4021 = vmatprep.subr.bf16.mxu1 %v4020_v55 }
 0x1e5   :  { %3590 = vmatmul.mubr.f32.gmra.mrb[14].mxu1 %v5811_v26 }
 0x1e6   :  { %4023 = vmatpush3.bf16.msra.mxu1 %v4020_v55  ;;  %3624 = vmatprep.mubr.msk.f32.mxu1 %vm967_vm3, %v4671_v1 }
 0x1e9   :  { %3625 = vmatmul.mubr.msk.f32.vlgmr.msra.gmra.mrb[0].mxu1 %vm967_vm3, %v4686_v9 }
 0x1ea   :  { %3627 = vmatprep.mubr.msk.f32.mxu1 %vm967_vm3, %v4729_v61 }
 0x1ed   :  { %3628 = vmatmul.mubr.msk.f32.gmra.mrb[2].mxu1 %vm967_vm3, %v4756_v51 }
 0x1ee   :  { %3630 = vmatprep.mubr.msk.f32.mxu1 %vm967_vm3, %v4773_v50 }
 0x1f1   :  { %3631 = vmatmul.mubr.msk.f32.gmra.mrb[4].mxu1 %vm967_vm3, %v4799_v14 }
 0x1f2   :  { %3633 = vmatprep.mubr.msk.f32.mxu1 %vm967_vm3, %v4848_v41 }
 0x1f5   :  { %3634 = vmatmul.mubr.f32.gmra.mrb[6].mxu1 %v5811_v26 }
 0x1f6   :  { %3636 = vmatprep.mubr.msk.f32.mxu1 %vm967_vm3, %v4874_v42 }
 0x1f9   :  { %3637 = vmatmul.mubr.msk.f32.gmra.mrb[8].mxu1 %vm967_vm3, %v4884_v48 }
 0x1fa   :  { %3639 = vmatprep.mubr.msk.f32.mxu1 %vm967_vm3, %v4914_v22  ;;  %v2193_v22 = vld [vmem:[%s5801_s7] sm:$0xff] }
 0x1fd   :  { %3640 = vmatmul.mubr.msk.f32.gmra.mrb[10].mxu1 %vm967_vm3, %v4924_v38  ;;  %v2194_v38 = vld [vmem:[%s5801_s7 + $0x8] sm:$0xff] }
 0x1fe   :  { %3642 = vmatprep.mubr.msk.f32.mxu1 %vm967_vm3, %v4952_v16  ;;  %v4024_v16 = vpack.c.bf16 %v2194_v38, %v2193_v22 }
 0x200   :  { %4025 = vmatprep.subr.bf16.mxu0 %v4024_v16 }
 0x201   :  { %3643 = vmatmul.mubr.msk.f32.gmra.mrb[12].mxu1 %vm967_vm3, %v4965_v54  ;;  %4027 = vmatpush3.bf16.msra.mxu0 %v4024_v16  ;;  %v2195_v54 = vld [vmem:[%s5801_s7 + $0x10] sm:$0xff] }
 0x202   :  { %3645 = vmatprep.mubr.msk.f32.mxu1 %vm967_vm3, %v4855_v7 }
 0x205   :  { %3646 = vmatmul.mubr.f32.gmra.mrb[14].mxu1 %v5811_v26  ;;  %v2196_v26 = vld [vmem:[%s5801_s7 + $0x18] sm:$0xff] }
 0x206   :  { %v4028_v53 = vpack.c.bf16 %v2196_v26, %v2195_v54 }
 0x208   :  { %4029 = vmatprep.subr.bf16.mxu0 %v4028_v53 }
 0x209   :  { %4031 = vmatpush3.bf16.msra.mxu0 %v4028_v53 }
 0x20a   :  { %4033 = vmatprep.subr.bf16.mxu0 %v4032_v49 }
 0x20d   :  { %4035 = vmatpush3.bf16.msra.mxu0 %v4032_v49 }
 0x20e   :  { %4037 = vmatprep.subr.bf16.mxu0 %v4036_v30 }
 0x211   :  { %4039 = vmatpush3.bf16.msra.mxu0 %v4036_v30 }
 0x212   :  { %4041 = vmatprep.subr.bf16.mxu0 %v4040_v47 }
 0x215   :  { %4043 = vmatpush3.bf16.msra.mxu0 %v4040_v47 }
 0x216   :  { %4045 = vmatprep.subr.bf16.mxu0 %v4044_v56 }
 0x219   :  { %4047 = vmatpush3.bf16.msra.mxu0 %v4044_v56 }
 0x21a   :  { %4049 = vmatprep.subr.bf16.mxu0 %v4048_v15 }
 0x21d   :  { %4051 = vmatpush3.bf16.msra.mxu0 %v4048_v15 }
 0x21e   :  { %4053 = vmatprep.subr.bf16.mxu0 %v4052_v6 }
 0x221   :  { %4055 = vmatpush3.bf16.msra.mxu0 %v4052_v6 }
 0x25d   :  { %v3290_v28 = vpop.f32.mrb[16].mxu0 }
 0x25e   :  { %v827_v1 = vpop.f32.mrb[17].mxu0 }
 0x261   :  { %v3293_v9 = vpop.f32.mrb[18].mxu0 }
 0x262   :  { %v5447_v61 = vpop.f32.mrb[19].mxu0 }
 0x265   :  { %v5449_v51 = vpop.f32.mrb[20].mxu0 }
 0x266   :  { %v5451_v50 = vpop.f32.mrb[21].mxu0 }
 0x269   :  { %v5453_v14 = vpop.f32.mrb[22].mxu0 }
 0x26a   :  { %v5455_v33 = vpop.f32.mrb[23].mxu0 }
 0x26d   :  { %v5457_v37 = vpop.f32.mrb[24].mxu0 }
 0x26e   :  { %v5459_v32 = vpop.f32.mrb[25].mxu0 }
 0x271   :  { %v5461_v60 = vpop.f32.mrb[26].mxu0 }
 0x272   :  { %v5463_v41 = vpop.f32.mrb[27].mxu0 }
 0x275   :  { %v5465_v7 = vpop.f32.mrb[28].mxu0 }
 0x276   :  { %v5467_v58 = vpop.f32.mrb[29].mxu0 }
 0x279   :  { %v5469_v42 = vpop.f32.mrb[30].mxu0 }
 0x27a   :  { %v5471_v48 = vpop.f32.mrb[31].mxu0 }
 0x2bc   :  { %v3626_v43 = vpop.f32.mrb[0].mxu1 }
 0x2bd   :  { %v5521_v24 = vadd.f32 %v3626_v43, %v3290_v28  ;;  %v1968_v35 = vpop.f32.mrb[1].mxu1 }
 0x2be   :  { %v5523_v11 = vadd.f32 %v1968_v35, %v827_v1 }
 0x2bf   :  { %v2087_v31 = vmul.f32 %v5521_v24, %v5521_v24 }
 0x2c0   :  { %v2086_v40 = vmul.f32 %v5523_v11, %v5523_v11  ;;  %v3629_v5 = vpop.f32.mrb[2].mxu1  ;;  %v2065_v18 = vadd.f32 %v5523_v11, %v5521_v24 }
 0x2c1   :  { %v5529_v45 = vadd.f32 %v3629_v5, %v3293_v9  ;;  %v1978_v29 = vpop.f32.mrb[3].mxu1 }
 0x2c2   :  { %v5534_v34 = vadd.f32 %v1978_v29, %v5447_v61  ;;  %v2102_v36 = vadd.f32 %v2087_v31, %v2086_v40 }
 0x2c3   :  { %v2089_v21 = vmul.f32 %v5529_v45, %v5529_v45 }
 0x2c4   :  { %v2066_v3 = vadd.f32 %v5534_v34, %v2065_v18  ;;  %v2088_v39 = vmul.f32 %v5534_v34, %v5534_v34  ;;  %v3632_v62 = vpop.f32.mrb[4].mxu1 }
 0x2c5   :  { %v5540_v17 = vadd.f32 %v3632_v62, %v5449_v51  ;;  %v1988_v20 = vpop.f32.mrb[5].mxu1 }
 0x2c6   :  { %v2103_v57 = vadd.f32 %v2102_v36, %v2088_v39  ;;  %v5545_v23 = vadd.f32 %v1988_v20, %v5451_v50  ;;  %v2067_v44 = vadd.f32 %v5529_v45, %v2066_v3 }
 0x2c7   :  { %v2091_v51 = vmul.f32 %v5540_v17, %v5540_v17 }
 0x2c8   :  { %v2068_v25 = vadd.f32 %v5545_v23, %v2067_v44  ;;  %v2090_v55 = vmul.f32 %v5545_v23, %v5545_v23  ;;  %v2104_v28 = vadd.f32 %v2103_v57, %v2089_v21  ;;  %v3635_v1 = vpop.f32.mrb[6].mxu1 }
 0x2c9   :  { %v5552_v9 = vadd.f32 %v3635_v1, %v5453_v14  ;;  %v1998_v61 = vpop.f32.mrb[7].mxu1 }
 0x2ca   :  { %v2105_v22 = vadd.f32 %v2104_v28, %v2090_v55  ;;  %v5557_v50 = vadd.f32 %v1998_v61, %v5455_v33  ;;  %v2069_v38 = vadd.f32 %v5540_v17, %v2068_v25 }
 0x2cb   :  { %v2093_v0 = vmul.f32 %v5552_v9, %v5552_v9 }
 0x2cc   :  { %v2070_v16 = vadd.f32 %v5557_v50, %v2069_v38  ;;  %v2092_v54 = vmul.f32 %v5557_v50, %v5557_v50  ;;  %v2106_v26 = vadd.f32 %v2105_v22, %v2091_v51  ;;  %v3638_v53 = vpop.f32.mrb[8].mxu1 }
 0x2cd   :  { %v5564_v14 = vadd.f32 %v3638_v53, %v5457_v37  ;;  %v2008_v59 = vpop.f32.mrb[9].mxu1 }
 0x2ce   :  { %v2107_v10 = vadd.f32 %v2106_v26, %v2092_v54  ;;  %v5569_v33 = vadd.f32 %v2008_v59, %v5459_v32  ;;  %v2071_v49 = vadd.f32 %v5552_v9, %v2070_v16 }
 0x2cf   :  { %v2095_v13 = vmul.f32 %v5564_v14, %v5564_v14 }
 0x2d0   :  { %v2072_v2 = vadd.f32 %v5569_v33, %v2071_v49  ;;  %v2094_v30 = vmul.f32 %v5569_v33, %v5569_v33  ;;  %v2108_v4 = vadd.f32 %v2107_v10, %v2093_v0  ;;  %v3641_v46 = vpop.f32.mrb[10].mxu1 }
 0x2d1   :  { %v5576_v37 = vadd.f32 %v3641_v46, %v5461_v60  ;;  %v2018_v47 = vpop.f32.mrb[11].mxu1 }
 0x2d2   :  { %v2109_v12 = vadd.f32 %v2108_v4, %v2094_v30  ;;  %v5581_v32 = vadd.f32 %v2018_v47, %v5463_v41  ;;  %v2073_v56 = vadd.f32 %v5564_v14, %v2072_v2  ;;  %v2063_v4 = vld [vmem:[%s5802_s5] sm:$0x1] }
 0x2d3   :  { %v2097_v6 = vmul.f32 %v5576_v37, %v5576_v37 }
 0x2d4   :  { %v2074_v52 = vadd.f32 %v5581_v32, %v2073_v56  ;;  %v2096_v27 = vmul.f32 %v5581_v32, %v5581_v32  ;;  %v2110_v15 = vadd.f32 %v2109_v12, %v2095_v13  ;;  %v3644_v8 = vpop.f32.mrb[12].mxu1  ;;  %v2064_v13 = vld [vmem:[%s5803_s6] sm:$0x1] }
 0x2d5   :  { %v5588_v60 = vadd.f32 %v3644_v8, %v5465_v7  ;;  %v2028_v19 = vpop.f32.mrb[13].mxu1 }
 0x2d6   :  { %v2111_v43 = vadd.f32 %v2110_v15, %v2096_v27  ;;  %v4069_v41 = vadd.f32 %v2028_v19, %v5467_v58  ;;  %v2075_v35 = vadd.f32 %v5576_v37, %v2074_v52 }
 0x2d7   :  { %v2099_v7 = vmul.f32 %v5588_v60, %v5588_v60 }
 0x2d8   :  { %v2076_v31 = vadd.f32 %v4069_v41, %v2075_v35  ;;  %v2098_v40 = vmul.f32 %v4069_v41, %v4069_v41  ;;  %v2112_v5 = vadd.f32 %v2111_v43, %v2097_v6  ;;  %v3647_v29 = vpop.f32.mrb[14].mxu1 }
 0x2d9   :  { %v5595_v18 = vadd.f32 %v3647_v29, %v5469_v42  ;;  %v2038_v36 = vpop.f32.mrb[15].mxu1 }
 0x2da   :  { %v2113_v3 = vadd.f32 %v2112_v5, %v2098_v40  ;;  %v4071_v39 = vadd.f32 %v2038_v36, %v5471_v48  ;;  %v2077_v62 = vadd.f32 %v5588_v60, %v2076_v31 }
 0x2db   :  { %v2101_v57 = vmul.f32 %v5595_v18, %v5595_v18 }
 0x2dc   :  { %v2078_v20 = vadd.f32 %v4071_v39, %v2077_v62  ;;  %v2100_v58 = vmul.f32 %v4071_v39, %v4071_v39  ;;  %v2114_v21 = vadd.f32 %v2113_v3, %v2099_v7 }
 0x2de   :  { %v2079_v44 = vadd.f32 %v5595_v18, %v2078_v20  ;;  %v2115_v25 = vadd.f32 %v2114_v21, %v2100_v58 }
 0x2e0   :  { %v2080_v42 = vrot.slane %v2079_v44, 4  ;;  %v2116_v55 = vadd.f32 %v2115_v25, %v2101_v57 }
 0x2e2   :  { %v2081_v28 = vadd.f32 %v2080_v42, %v2079_v44  ;;  %v2117_v1 = vrot.slane %v2116_v55, 4 }
 0x2e4   :  { %v2082_v61 = vrot.slane %v2081_v28, 2  ;;  %v2118_v51 = vadd.f32 %v2117_v1, %v2116_v55 }
 0x2e6   :  { %v2083_v22 = vadd.f32 %v2082_v61, %v2081_v28  ;;  %v2119_v38 = vrot.slane %v2118_v51, 2 }
 0x2e8   :  { %v2084_v48 = vrot.slane %v2083_v22, 1  ;;  %v2120_v16 = vadd.f32 %v2119_v38, %v2118_v51 }
 0x2ea   :  { %v2085_v54 = vadd.f32 %v2084_v48, %v2083_v22  ;;  %v2121_v26 = vrot.slane %v2120_v16, 1 }
 0x2ec   :  { %v2122_v53 = vadd.f32 %v2121_v26, %v2120_v16  ;;  %v2123_v59 = vmul.f32 0.0078125, %v2085_v54 }
 0x2ee   :  { %v2124_v0 = vmul.f32 0.0078125, %v2122_v53  ;;  %v2125_v10 = vmul.f32 %v2123_v59, %v2123_v59 }
 0x2f0   :  { %v2126_v49 = vsub.f32 %v2124_v0, %v2125_v10 }
 0x2f2   :  { %v2127_v2 = vmax.f32 %v2126_v49, 0.0 }
 0x2f4   :  { %v2128_v30 = vadd.f32 1e-05, %v2127_v2 }
 0x2f6   :  { %4187 = vrsqrt.f32 %v2128_v30 }
 0x300   :  { %v4188_v46 = vpop.eup %4187 }
 0x301   :  { %v2130_v47 = vmul.f32 %v4188_v46, %v2063_v4 }
 0x303   :  { %v2131_v12 = vmul.f32 %v2130_v47, %v2123_v59  ;;  %v2137_v56 = vrot.slane %v2130_v47, %v4551_v63 }
 0x305   :  { %v2132_v52 = vsub.f32 %v2064_v13, %v2131_v12  ;;  %v2153_v27 = vmul.f32 %v4071_v39, %v2137_v56  ;;  %v2139_v15 = vmul.f32 %v5523_v11, %v2137_v56  ;;  %v2140_v8 = vmul.f32 %v5521_v24, %v2137_v56 }
 0x306   :  { %v2141_v19 = vmul.f32 %v5534_v34, %v2137_v56  ;;  %v2142_v6 = vmul.f32 %v5529_v45, %v2137_v56  ;;  %v2143_v43 = vmul.f32 %v5545_v23, %v2137_v56  ;;  %v2144_v35 = vmul.f32 %v5540_v17, %v2137_v56 }
 0x307   :  { %v2159_v31 = vrot.slane %v2132_v52, %v4551_v63  ;;  %v2145_v40 = vmul.f32 %v5557_v50, %v2137_v56  ;;  %v2146_v5 = vmul.f32 %v5552_v9, %v2137_v56  ;;  %v2147_v29 = vmul.f32 %v5569_v33, %v2137_v56 }
 0x308   :  { %v2148_v11 = vmul.f32 %v5564_v14, %v2137_v56  ;;  %v2149_v24 = vmul.f32 %v5581_v32, %v2137_v56  ;;  %v2150_v34 = vmul.f32 %v5576_v37, %v2137_v56  ;;  %v2151_v36 = vmul.f32 %v4069_v41, %v2137_v56 }
 0x309   :  { %v2161_v45 = vadd.f32 %v2159_v31, %v2139_v15  ;;  %v2162_v7 = vadd.f32 %v2159_v31, %v2140_v8  ;;  %v2163_v23 = vadd.f32 %v2159_v31, %v2141_v19  ;;  %v2164_v3 = vadd.f32 %v2159_v31, %v2142_v6 }
 0x30a   :  { %v2165_v17 = vadd.f32 %v2159_v31, %v2143_v43  ;;  %v2166_v39 = vadd.f32 %v2159_v31, %v2144_v35  ;;  %v2167_v62 = vadd.f32 %v2159_v31, %v2145_v40  ;;  %v2168_v20 = vadd.f32 %v2159_v31, %v2146_v5 }
 0x30b   :  { %v2177_v50 = vmax.f32 %v2161_v45, 0.0  ;;  %v2178_v58 = vmax.f32 %v2162_v7, 0.0  ;;  %v2179_v9 = vmax.f32 %v2163_v23, 0.0  ;;  %v2169_v33 = vadd.f32 %v2159_v31, %v2147_v29 }
 0x30c   :  { %v2170_v21 = vadd.f32 %v2159_v31, %v2148_v11  ;;  %v2171_v14 = vadd.f32 %v2159_v31, %v2149_v24  ;;  %v2172_v57 = vadd.f32 %v2159_v31, %v2150_v34  ;;  %v2173_v32 = vadd.f32 %v2159_v31, %v2151_v36 }
 0x30d   :  { %3680 = vmatprep.mubr.f32.mxu0 %v2177_v50  ;;  %v2152_v37 = vmul.f32 %v5588_v60, %v2137_v56  ;;  %v2175_v41 = vadd.f32 %v2159_v31, %v2153_v27  ;;  %v2154_v44 = vmul.f32 %v5595_v18, %v2137_v56  ;;  %v2180_v25 = vmax.f32 %v2164_v3, 0.0 }
 0x30e   :  { %3681 = vmatmul.mubr.f32.vlgmr.msra.gmra.mrb[32].mxu0 %v2178_v58  ;;  %v2181_v28 = vmax.f32 %v2165_v17, 0.0  ;;  %v2182_v1 = vmax.f32 %v2166_v39, 0.0  ;;  %v2183_v61 = vmax.f32 %v2167_v62, 0.0  ;;  %v2184_v51 = vmax.f32 %v2168_v20, 0.0 }
 0x30f   :  { %3683 = vmatprep.mubr.f32.mxu0 %v2179_v9  ;;  %v2174_v42 = vadd.f32 %v2159_v31, %v2152_v37  ;;  %v2176_v55 = vadd.f32 %v2159_v31, %v2154_v44  ;;  %v2185_v22 = vmax.f32 %v2169_v33, 0.0  ;;  %v2186_v38 = vmax.f32 %v2170_v21, 0.0 }
 0x310   :  { %v2187_v60 = vmax.f32 %v2171_v14, 0.0  ;;  %v2188_v18 = vmax.f32 %v2172_v57, 0.0  ;;  %v2189_v48 = vmax.f32 %v2173_v32, 0.0  ;;  %v2191_v54 = vmax.f32 %v2175_v41, 0.0 }
 0x311   :  { %v2190_v16 = vmax.f32 %v2174_v42, 0.0  ;;  %v2192_v26 = vmax.f32 %v2176_v55, 0.0 }
 0x312   :  { %3684 = vmatmul.mubr.f32.gmra.mrb[34].mxu0 %v2180_v25 }
 0x313   :  { %3686 = vmatprep.mubr.f32.mxu0 %v2181_v28 }
 0x316   :  { %3687 = vmatmul.mubr.f32.gmra.mrb[36].mxu0 %v2182_v1 }
 0x317   :  { %3689 = vmatprep.mubr.f32.mxu0 %v2183_v61 }
 0x31a   :  { %3690 = vmatmul.mubr.f32.gmra.mrb[38].mxu0 %v2184_v51 }
 0x31b   :  { %3692 = vmatprep.mubr.f32.mxu0 %v2185_v22 }
 0x31e   :  { %3693 = vmatmul.mubr.f32.gmra.mrb[40].mxu0 %v2186_v38 }
 0x31f   :  { %3695 = vmatprep.mubr.f32.mxu0 %v2187_v60 }
 0x322   :  { %3696 = vmatmul.mubr.f32.gmra.mrb[42].mxu0 %v2188_v18 }
 0x323   :  { %3698 = vmatprep.mubr.f32.mxu0 %v2189_v48 }
 0x326   :  { %3699 = vmatmul.mubr.f32.gmra.mrb[44].mxu0 %v2190_v16 }
 0x327   :  { %3701 = vmatprep.mubr.f32.mxu0 %v2191_v54 }
 0x32a   :  { %3702 = vmatmul.mubr.f32.gmra.mrb[46].mxu0 %v2192_v26 }
 0x3e1   :  { %v5626_v53 = vpop.f32.mrb[32].mxu0 }
 0x3e2   :  { %v2378_v59 = vmul.f32 %v5626_v53, %v5626_v53  ;;  %v5630_v0 = vpop.f32.mrb[33].mxu0 }
 0x3e3   :  { %v2356_v10 = vadd.f32 %v5626_v53, %v5630_v0  ;;  %v2377_v49 = vmul.f32 %v5630_v0, %v5630_v0 }
 0x3e5   :  { %v2393_v2 = vadd.f32 %v2378_v59, %v2377_v49  ;;  %v5636_v30 = vpop.f32.mrb[34].mxu0 }
 0x3e6   :  { %v5638_v4 = vpop.f32.mrb[35].mxu0  ;;  %v2380_v13 = vmul.f32 %v5636_v30, %v5636_v30 }
 0x3e7   :  { %v2357_v46 = vadd.f32 %v2356_v10, %v5638_v4  ;;  %v2379_v47 = vmul.f32 %v5638_v4, %v5638_v4 }
 0x3e9   :  { %v2394_v12 = vadd.f32 %v2393_v2, %v2379_v47  ;;  %v5645_v56 = vpop.f32.mrb[36].mxu0  ;;  %v2358_v52 = vadd.f32 %v5636_v30, %v2357_v46 }
 0x3ea   :  { %v5648_v27 = vpop.f32.mrb[37].mxu0  ;;  %v2382_v6 = vmul.f32 %v5645_v56, %v5645_v56 }
 0x3eb   :  { %v2359_v15 = vadd.f32 %v2358_v52, %v5648_v27  ;;  %v2381_v8 = vmul.f32 %v5648_v27, %v5648_v27  ;;  %v2395_v19 = vadd.f32 %v2394_v12, %v2380_v13 }
 0x3ed   :  { %v2396_v43 = vadd.f32 %v2395_v19, %v2381_v8  ;;  %v5655_v35 = vpop.f32.mrb[38].mxu0  ;;  %v2360_v31 = vadd.f32 %v5645_v56, %v2359_v15 }
 0x3ee   :  { %v5658_v40 = vpop.f32.mrb[39].mxu0  ;;  %v2384_v24 = vmul.f32 %v5655_v35, %v5655_v35 }
 0x3ef   :  { %v2361_v5 = vadd.f32 %v2360_v31, %v5658_v40  ;;  %v2383_v29 = vmul.f32 %v5658_v40, %v5658_v40  ;;  %v2397_v11 = vadd.f32 %v2396_v43, %v2382_v6 }
 0x3f1   :  { %v2398_v34 = vadd.f32 %v2397_v11, %v2383_v29  ;;  %v5665_v36 = vpop.f32.mrb[40].mxu0  ;;  %v2362_v45 = vadd.f32 %v5655_v35, %v2361_v5  ;;  %v2354_v11 = vld [vmem:[%s5804_s8] sm:$0x1] }
 0x3f2   :  { %v5668_v7 = vpop.f32.mrb[41].mxu0  ;;  %v2386_v39 = vmul.f32 %v5665_v36, %v5665_v36 }
 0x3f3   :  { %v2363_v23 = vadd.f32 %v2362_v45, %v5668_v7  ;;  %v2385_v3 = vmul.f32 %v5668_v7, %v5668_v7  ;;  %v2399_v17 = vadd.f32 %v2398_v34, %v2384_v24  ;;  %v2355_v45 = vld [vmem:[%s5805_s9] sm:$0x1] }
 0x3f5   :  { %v2400_v62 = vadd.f32 %v2399_v17, %v2385_v3  ;;  %v5675_v20 = vpop.f32.mrb[42].mxu0  ;;  %v2364_v50 = vadd.f32 %v5665_v36, %v2363_v23 }
 0x3f6   :  { %v2325_v58 = vpop.f32.mrb[43].mxu0  ;;  %v2388_v14 = vmul.f32 %v5675_v20, %v5675_v20 }
 0x3f7   :  { %v2365_v9 = vadd.f32 %v2364_v50, %v2325_v58  ;;  %v2387_v33 = vmul.f32 %v2325_v58, %v2325_v58  ;;  %v2401_v21 = vadd.f32 %v2400_v62, %v2386_v39 }
 0x3f9   :  { %v2402_v57 = vadd.f32 %v2401_v21, %v2387_v33  ;;  %v3700_v32 = vpop.f32.mrb[44].mxu0  ;;  %v2366_v37 = vadd.f32 %v5675_v20, %v2365_v9 }
 0x3fa   :  { %v2335_v41 = vpop.f32.mrb[45].mxu0  ;;  %v2390_v55 = vmul.f32 %v3700_v32, %v3700_v32 }
 0x3fb   :  { %v2367_v44 = vadd.f32 %v2366_v37, %v2335_v41  ;;  %v2389_v25 = vmul.f32 %v2335_v41, %v2335_v41  ;;  %v2403_v42 = vadd.f32 %v2402_v57, %v2388_v14 }
 0x3fd   :  { %v2404_v28 = vadd.f32 %v2403_v42, %v2389_v25  ;;  %v3703_v1 = vpop.f32.mrb[46].mxu0  ;;  %v2368_v61 = vadd.f32 %v3700_v32, %v2367_v44 }
 0x3fe   :  { %v2345_v51 = vpop.f32.mrb[47].mxu0  ;;  %v2392_v18 = vmul.f32 %v3703_v1, %v3703_v1 }
 0x3ff   :  { %v2369_v22 = vadd.f32 %v2368_v61, %v2345_v51  ;;  %v2391_v38 = vmul.f32 %v2345_v51, %v2345_v51  ;;  %v2405_v60 = vadd.f32 %v2404_v28, %v2390_v55 }
 0x401   :  { %v2370_v48 = vadd.f32 %v3703_v1, %v2369_v22  ;;  %v2406_v16 = vadd.f32 %v2405_v60, %v2391_v38 }
 0x403   :  { %v2371_v54 = vrot.slane %v2370_v48, 4  ;;  %v2407_v26 = vadd.f32 %v2406_v16, %v2392_v18  ;;  %v4193_v16 = vld [vmem:[%s5797_s0 + $0x10] sm:$0xff] }
 0x405   :  { %v2372_v59 = vadd.f32 %v2371_v54, %v2370_v48  ;;  %v2408_v10 = vrot.slane %v2407_v26, 4 }
 0x407   :  { %v2373_v49 = vrot.slane %v2372_v59, 2  ;;  %v2409_v2 = vadd.f32 %v2408_v10, %v2407_v26  ;;  %v4194_v26 = vld [vmem:[%s5797_s0 + $0x18] sm:$0xff]  ;;  %v4195_v10 = vld [vmem:[%s5797_s0 + $0x20] sm:$0xff] }
 0x409   :  { %v2374_v46 = vadd.f32 %v2373_v49, %v2372_v59  ;;  %v2410_v47 = vrot.slane %v2409_v2, 2 }
 0x40b   :  { %v2375_v13 = vrot.slane %v2374_v46, 1  ;;  %v2411_v12 = vadd.f32 %v2410_v47, %v2409_v2  ;;  %v4196_v2 = vld [vmem:[%s5797_s0 + $0x28] sm:$0xff]  ;;  %v4197_v47 = vld [vmem:[%s5797_s0 + $0x30] sm:$0xff] }
 0x40d   :  { %v2376_v52 = vadd.f32 %v2375_v13, %v2374_v46  ;;  %v2412_v15 = vrot.slane %v2411_v12, 1 }
 0x40f   :  { %v2413_v8 = vadd.f32 %v2412_v15, %v2411_v12  ;;  %v2414_v19 = vmul.f32 0.0078125, %v2376_v52  ;;  %v4198_v12 = vld [vmem:[%s5797_s0 + $0x38] sm:$0xff]  ;;  %v4199_v15 = vld [vmem:[%s5797_s0 + $0x40] sm:$0xff] }
 0x411   :  { %v2415_v6 = vmul.f32 0.0078125, %v2413_v8  ;;  %v2416_v43 = vmul.f32 %v2414_v19, %v2414_v19 }
 0x413   :  { %v2417_v31 = vsub.f32 %v2415_v6, %v2416_v43  ;;  %v4201_v43 = vld [vmem:[%s5797_s0 + $0x50] sm:$0xff] }
 0x415   :  { %v2418_v5 = vmax.f32 %v2417_v31, 0.0 }
 0x417   :  { %v2419_v29 = vadd.f32 1e-05, %v2418_v5  ;;  %v4202_v5 = vld [vmem:[%s5797_s0 + $0x58] sm:$0xff] }
 0x419   :  { %4189 = vrsqrt.f32 %v2419_v29 }
 0x423   :  { %v4190_v24 = vpop.eup %4189 }
 0x424   :  { %v2421_v34 = vmul.f32 %v4190_v24, %v2354_v11  ;;  %v4203_v11 = vld [vmem:[%s5797_s0 + $0x60] sm:$0xff] }
 0x426   :  { %v2422_v23 = vmul.f32 %v2421_v34, %v2414_v19  ;;  %v2428_v3 = vrot.slane %v2421_v34, %v4551_v63  ;;  %v4200_v19 = vld [vmem:[%s5797_s0 + $0x48] sm:$0xff] }
 0x427   :  { %v4204_v34 = vld [vmem:[%s5797_s0 + $0x68] sm:$0xff] }
 0x428   :  { %v2423_v17 = vsub.f32 %v2355_v45, %v2422_v23  ;;  %v2430_v39 = vmul.f32 %v2428_v3, %v5630_v0  ;;  %v2431_v62 = vmul.f32 %v5626_v53, %v2428_v3  ;;  %v2432_v50 = vmul.f32 %v2428_v3, %v5638_v4  ;;  %v4205_v23 = vld [vmem:[%s5797_s0 + $0x70] sm:$0xff] }
 0x429   :  { %v2433_v9 = vmul.f32 %v5636_v30, %v2428_v3  ;;  %v2434_v33 = vmul.f32 %v2428_v3, %v5648_v27  ;;  %v2435_v21 = vmul.f32 %v5645_v56, %v2428_v3  ;;  %v2436_v14 = vmul.f32 %v2428_v3, %v5658_v40 }
 0x42a   :  { %v2437_v57 = vmul.f32 %v5655_v35, %v2428_v3  ;;  %v2438_v37 = vmul.f32 %v2428_v3, %v5668_v7  ;;  %v2439_v44 = vmul.f32 %v5665_v36, %v2428_v3  ;;  %v2440_v25 = vmul.f32 %v2428_v3, %v2325_v58 }
 0x42b   :  { %v2441_v0 = vmul.f32 %v5675_v20, %v2428_v3  ;;  %v2442_v53 = vmul.f32 %v2428_v3, %v2335_v41  ;;  %v2443_v42 = vmul.f32 %v3700_v32, %v2428_v3  ;;  %v2444_v4 = vmul.f32 %v2428_v3, %v2345_v51  ;;  %v4192_v51 = vld [vmem:[%s5797_s0 + $0x8] sm:$0xff] }
 0x42c   :  { %v2445_v55 = vmul.f32 %v3703_v1, %v2428_v3  ;;  %v2450_v30 = vrot.slane %v2423_v17, %v4551_v63  ;;  %v4191_v63 = vld [vmem:[%s5797_s0] sm:$0xff]  ;;  %v4206_v17 = vld [vmem:[%s5797_s0 + $0x78] sm:$0xff] }
 0x42e   :  { %v2452_v27 = vadd.f32 %v2450_v30, %v2430_v39  ;;  %v2453_v28 = vadd.f32 %v2450_v30, %v2431_v62  ;;  %v2454_v56 = vadd.f32 %v2450_v30, %v2432_v50  ;;  %v2455_v61 = vadd.f32 %v2450_v30, %v2433_v9 }
 0x42f   :  { %v2456_v40 = vadd.f32 %v2450_v30, %v2434_v33  ;;  %v2457_v22 = vadd.f32 %v2450_v30, %v2435_v21  ;;  %v2458_v35 = vadd.f32 %v2450_v30, %v2436_v14  ;;  %v2459_v38 = vadd.f32 %v2450_v30, %v2437_v57 }
 0x430   :  { %v2460_v7 = vadd.f32 %v2450_v30, %v2438_v37  ;;  %v2461_v60 = vadd.f32 %v2450_v30, %v2439_v44  ;;  %v2462_v36 = vadd.f32 %v2450_v30, %v2440_v25  ;;  %v2463_v58 = vadd.f32 %v2450_v30, %v2441_v0 }
 0x431   :  { %v2464_v18 = vadd.f32 %v2450_v30, %v2442_v53  ;;  %v2465_v20 = vadd.f32 %v2450_v30, %v2443_v42  ;;  %v2466_v41 = vadd.f32 %v2450_v30, %v2444_v4  ;;  %v2467_v32 = vadd.f32 %v2450_v30, %v2445_v55 }
 0x432   :  { %v2468_v1 = vadd.f32 %v4191_v63, %v2452_v27  ;;  %v2469_v48 = vadd.f32 %v4192_v51, %v2453_v28  ;;  %v2470_v54 = vadd.f32 %v4193_v16, %v2454_v56  ;;  %v2471_v59 = vadd.f32 %v4194_v26, %v2455_v61 }
 0x433   :  { %v2472_v49 = vadd.f32 %v4195_v10, %v2456_v40  ;;  %v2473_v46 = vadd.f32 %v4196_v2, %v2457_v22  ;;  %v2474_v13 = vadd.f32 %v4197_v47, %v2458_v35  ;;  %v2475_v52 = vadd.f32 %v4198_v12, %v2459_v38 }
 0x434   :  { %v2476_v8 = vadd.f32 %v4199_v15, %v2460_v7  ;;  %v2477_v6 = vadd.f32 %v4200_v19, %v2461_v60  ;;  %v2478_v31 = vadd.f32 %v4201_v43, %v2462_v36  ;;  %v2479_v29 = vadd.f32 %v4202_v5, %v2463_v58 }
 0x435   :  { %v2480_v24 = vadd.f32 %v4203_v11, %v2464_v18  ;;  %v2481_v45 = vadd.f32 %v4204_v34, %v2465_v20  ;;  %v2482_v3 = vadd.f32 %v4205_v23, %v2466_v41  ;;  %v2483_v39 = vadd.f32 %v4206_v17, %v2467_v32 }
 0x436   :  { %v2484_v62 = vmax.f32 %v2468_v1, 0.0  ;;  %v2485_v50 = vmax.f32 %v2469_v48, 0.0  ;;  %v2486_v9 = vmax.f32 %v2470_v54, 0.0  ;;  %v2487_v33 = vmax.f32 %v2471_v59, 0.0 }
 0x437   :  { %v2488_v21 = vmax.f32 %v2472_v49, 0.0  ;;  %v2489_v14 = vmax.f32 %v2473_v46, 0.0  ;;  %v2490_v57 = vmax.f32 %v2474_v13, 0.0  ;;  %v2491_v37 = vmax.f32 %v2475_v52, 0.0 }
 0x438   :  { %v2492_v44 = vmax.f32 %v2476_v8, 0.0  ;;  %v2493_v25 = vmax.f32 %v2477_v6, 0.0  ;;  %v2494_v0 = vmax.f32 %v2478_v31, 0.0  ;;  %v2495_v53 = vmax.f32 %v2479_v29, 0.0  ;;  %2500 = vst [vmem:[%s5806_s10] sm:$0xff] %v2484_v62  ;;  %2501 = vst [vmem:[%s5806_s10 + $0x8] sm:$0xff] %v2485_v50 }
 0x439   :  { %2502 = vst [vmem:[%s5806_s10 + $0x10] sm:$0xff] %v2486_v9  ;;  %2503 = vst [vmem:[%s5806_s10 + $0x18] sm:$0xff] %v2487_v33  ;;  %v2496_v42 = vmax.f32 %v2480_v24, 0.0  ;;  %v2497_v4 = vmax.f32 %v2481_v45, 0.0  ;;  %v2498_v55 = vmax.f32 %v2482_v3, 0.0  ;;  %v2499_v30 = vmax.f32 %v2483_v39, 0.0 }
 0x43a   :  { %2504 = vst [vmem:[%s5806_s10 + $0x20] sm:$0xff] %v2488_v21  ;;  %2505 = vst [vmem:[%s5806_s10 + $0x28] sm:$0xff] %v2489_v14 }
 0x43b   :  { %2506 = vst [vmem:[%s5806_s10 + $0x30] sm:$0xff] %v2490_v57  ;;  %2507 = vst [vmem:[%s5806_s10 + $0x38] sm:$0xff] %v2491_v37 }
 0x43c   :  { %2508 = vst [vmem:[%s5806_s10 + $0x40] sm:$0xff] %v2492_v44  ;;  %2509 = vst [vmem:[%s5806_s10 + $0x48] sm:$0xff] %v2493_v25 }
 0x43d   :  { %2510 = vst [vmem:[%s5806_s10 + $0x50] sm:$0xff] %v2494_v0  ;;  %2511 = vst [vmem:[%s5806_s10 + $0x58] sm:$0xff] %v2495_v53 }
 0x43e   :  { %2512 = vst [vmem:[%s5806_s10 + $0x60] sm:$0xff] %v2496_v42  ;;  %2513 = vst [vmem:[%s5806_s10 + $0x68] sm:$0xff] %v2497_v4 }
 0x43f   :  { %2514 = vst [vmem:[%s5806_s10 + $0x70] sm:$0xff] %v2498_v55  ;;  %2515 = vst [vmem:[%s5806_s10 + $0x78] sm:$0xff] %v2499_v30 }

</bundles_post_ra>
